<compile_context>
chip_gen: v7x
topology: tpu7x:2x2x1
jax: 0.10.0
libtpu: 0.0.40
codegen_flags: <defaults>
</compile_context>

<pallas_src>
from functools import partial

import jax
import jax.numpy as jnp
from jax.experimental import pallas as pl
from jax.experimental.pallas import tpu as pltpu


def _round_up(n, m):
    return ((n + m - 1) // m) * m


def _convgru_kernel(h_ref, x_ref, mask_ref, wz_ref, wch_ref, out_ref,
                    im1_ref, im2_ref, *, H, W, k, Chid, Cin, Cz_pad):
    """Single grid step, all batch elements collapsed into the lane axis.

    h_ref    : (B, Chid, HW) f32   previous hidden state (NCHW, flat spatial)
    x_ref    : (B, Cin,  HW) f32   input
    mask_ref : (k*k, 1, B*HW) f32  border masks (reproduce SAME zero padding)
    wz_ref   : (3*Chid, k*k*Cz_pad + 8)  fused phase-1 weights + bias column
    wch_ref  : (Chid,  k*k*Chid)         phase-2 (candidate <- reset*h) weights
    out_ref  : (B, Chid, HW) f32   next hidden state
    im1_ref  : (k*k*Cz_pad + 8, B*HW) f32 VMEM scratch, phase-1 im2col
    im2_ref  : (k*k*Chid,       B*HW) f32 VMEM scratch, phase-2 im2col
    """
    B = h_ref.shape[0]
    HW = H * W
    L = B * HW
    KK = k * k
    p = k // 2
    C = Chid
    Cz = Chid + Cin
    K1 = KK * Cz_pad                     # data rows; ones/bias row sits at K1
    cdt = wz_ref.dtype                   # MXU operand dtype (f32 or bf16)
    center = p * k + p

    # Static per-window lane shifts. Masks are precomputed (wrapper input).
    shifts = [(-((dy - p) * W + (dx - p))) % L
              for dy in range(k) for dx in range(k)]

    def window(a, w):
        """`a` viewed at spatial offset (dy-p, dx-p) with zero padding."""
        s = shifts[w]
        if s:
            a = pltpu.roll(a, shift=s, axis=1)       # XLU lane rotation
        if w != center:
            a = a * mask_ref[w]                      # (1, L) border mask
        return a

    # Batch collapsed into lanes (lane = b*HW + pixel). Lane concat at 128-
    # aligned offsets is cheap; masks (built from lane % HW) zero wraparound.
    h_full = jnp.concatenate([h_ref[b] for b in range(B)], axis=1)   # (C, L)
    x_full = jnp.concatenate([x_ref[b] for b in range(B)], axis=1)   # (Cin, L)

    # ---- phase 1: im2col scatter + ONE fused matmul ------------------------
    # scratch rows: KK blocks of Cz_pad rows ([h ; x ; zero pad]) followed by
    # an 8-row bias block whose first row is all ones (bias folded into MXU).
    im1_ref[...] = jnp.zeros_like(im1_ref)            # zeroes pad + bias block
    im1_ref[K1:K1 + 1, :] = jnp.ones((1, L), im1_ref.dtype)
    for w in range(KK):
        base = w * Cz_pad                              # 16-row blocks, 8-aligned
        im1_ref[base:base + Chid, :] = window(h_full, w)
        im1_ref[base + Chid:base + Cz, :] = window(x_full, w)

    acc = jnp.dot(wz_ref[...], im1_ref[...].astype(cdt),
                  preferred_element_type=jnp.float32)   # (3C, L), bias included
    reset = jax.nn.sigmoid(acc[0:C, :])                 # gamma rows
    update = jax.nn.sigmoid(acc[C:2 * C, :])            # beta rows
    cand_x = acc[2 * C:3 * C, :]                        # candidate, x half

    # ---- phase 2: im2col of reset*h + ONE matmul ---------------------------
    rh = reset * h_full                                 # f32
    for w in range(KK):
        im2_ref[w * Chid:(w + 1) * Chid, :] = window(rh, w)
    acc_c = jnp.dot(wch_ref[...], im2_ref[...].astype(cdt),
                    preferred_element_type=jnp.float32)

    cand = jnp.tanh(cand_x + acc_c)
    h_next = h_full + update * (cand - h_full)          # == (1-u)*h + u*cand
    for b in range(B):
        out_ref[b] = h_next[:, b * HW:(b + 1) * HW].astype(out_ref.dtype)


def pack_params(torch_params, input_dim, hidden_dim, kernel_size,
                compute_dtype=jnp.float32):
    """PyTorch-shaped params -> fused im2col weight layout.

    torch_params: (conv_gates.weight (2C, Cin+C, k, k), conv_gates.bias (2C,),
                   conv.weight (C, Cin+C, k, k),        conv.bias (C,))
    Returns (wz, wch):
      wz  (3C, k*k*Cz_pad + 8): per-window column blocks [h-cols ; x-cols ; 0]
            with output rows [reset ; update ; candidate-x]; last block's first
            column carries the bias (matched to the kernel's ones row).
      wch (C, k*k*C): candidate conv, hidden-channel taps (applied to reset*h).
    """
    wg, bg, wc, bc = torch_params
    k = kernel_size
    Cin, C = input_dim, hidden_dim
    Cz = Cin + C
    Cz_pad = _round_up(Cz, 8)
    dt = jnp.float32

    blocks = []
    zero_cand_h = jnp.zeros((C, C), dt)
    zero_pad = jnp.zeros((3 * C, Cz_pad - Cz), dt)
    for dy in range(k):
        for dx in range(k):
            gh = wg[:, Cin:, dy, dx]                      # (2C, C)  gates <- h
            gx = wg[:, :Cin, dy, dx]                      # (2C, Cin) gates <- x
            cx = wc[:, :Cin, dy, dx]                      # (C, Cin)  cand  <- x
            col_h = jnp.concatenate([gh, zero_cand_h], axis=0)   # (3C, C)
            col_x = jnp.concatenate([gx, cx], axis=0)            # (3C, Cin)
            blocks.append(jnp.concatenate([col_h, col_x, zero_pad], axis=1))
    bias_col = jnp.concatenate([bg, bc]).reshape(3 * C, 1).astype(dt)
    bias_blk = jnp.concatenate([bias_col, jnp.zeros((3 * C, 7), dt)], axis=1)
    wz = jnp.concatenate(blocks + [bias_blk], axis=1)     # (3C, k*k*Cz_pad + 8)

    wch = jnp.concatenate([wc[:, Cin:, dy, dx]
                           for dy in range(k) for dx in range(k)], axis=1)
    return wz.astype(compute_dtype), wch.astype(compute_dtype)


def _make_border_mask(B, H, W, k):
    """(k*k, 1, B*HW) f32 multiplicative masks reproducing SAME zero padding."""
    HW = H * W
    L = B * HW
    p = k // 2
    pos = jnp.arange(L, dtype=jnp.int32) % HW     # pixel index within its batch
    col = pos % W
    row = pos // W
    rows = []
    for dy in range(k):
        for dx in range(k):
            oy, ox = dy - p, dx - p
            valid = ((col + ox >= 0) & (col + ox < W) &
                     (row + oy >= 0) & (row + oy < H))
            rows.append(valid)
    return jnp.stack(rows).astype(jnp.float32).reshape(k * k, 1, L)


def conv_gru_cell(x, h, packed_params, kernel_size):
    """x: (B, Cin, H, W) f32, h: (B, Chid, H, W) f32 (PyTorch NCHW layout)."""
    B, Cin, H, W = x.shape
    Chid = h.shape[1]
    k = kernel_size
    KK = k * k
    HW = H * W
    L = B * HW
    Cz = Cin + Chid
    Cz_pad = _round_up(Cz, 8)
    C3 = 3 * Chid
    K1tot = KK * Cz_pad + 8          # + 8-row bias block (constant-ones row)
    K2 = KK * Chid
    wz, wch = packed_params
    assert wz.shape == (C3, K1tot) and wch.shape == (Chid, K2)
    assert Chid % 8 == 0, "pad hidden_dim to a multiple of 8 (sublane alignment)"
    assert L % 128 == 0, "B*H*W must be a multiple of 128 (lane alignment)"

    hr = h.reshape(B, Chid, HW)
    xr = x.reshape(B, Cin, HW)
    border_mask = _make_border_mask(B, H, W, k)

    kernel = partial(_convgru_kernel, H=H, W=W, k=k, Chid=Chid, Cin=Cin,
                     Cz_pad=Cz_pad)

    witem = jnp.dtype(wz.dtype).itemsize
    flops = 2 * L * (C3 * K1tot + Chid * K2)
    bytes_accessed = (B * Cz * HW * 4 + B * Chid * HW * 4
                      + (C3 * K1tot + Chid * K2) * witem + KK * L * 4)

    out = pl.pallas_call(
        kernel,
        out_shape=jax.ShapeDtypeStruct((B, Chid, HW), h.dtype),
        grid=(1,),
        in_specs=[
            pl.BlockSpec((B, Chid, HW), lambda i: (0, 0, 0)),
            pl.BlockSpec((B, Cin, HW), lambda i: (0, 0, 0)),
            pl.BlockSpec((KK, 1, L), lambda i: (0, 0, 0)),
            pl.BlockSpec((C3, K1tot), lambda i: (0, 0)),
            pl.BlockSpec((Chid, K2), lambda i: (0, 0)),
        ],
        out_specs=pl.BlockSpec((B, Chid, HW), lambda i: (0, 0, 0)),
        scratch_shapes=[
            pltpu.VMEM((K1tot, L), jnp.float32),   # phase-1 im2col
            pltpu.VMEM((K2, L), jnp.float32),      # phase-2 im2col
        ],
        input_output_aliases={0: 0},   # h buffer may be reused for h_next
        compiler_params=pltpu.CompilerParams(
            dimension_semantics=("arbitrary",)),
        cost_estimate=pl.CostEstimate(
            flops=int(flops),
            transcendentals=int(3 * Chid * L),
            bytes_accessed=int(bytes_accessed)),
    )(hr, xr, border_mask, wz, wch)
    return out.reshape(B, Chid, H, W)


def _reference_conv_gru(x, h, torch_params, kernel_size):
    """Pure-JAX NCHW reference mirroring the PyTorch module exactly."""
    wg, bg, wc, bc = torch_params
    Chid = h.shape[1]
    dn = ("NCHW", "OIHW", "NCHW")

    def conv(inp, w, b):
        out = jax.lax.conv_general_dilated(inp, w, (1, 1), "SAME",
                                           dimension_numbers=dn)
        return out + b.reshape(1, -1, 1, 1)

    z = conv(jnp.concatenate([x, h], axis=1), wg, bg)
    gamma, beta = z[:, :Chid], z[:, Chid:]
    reset_gate = jax.nn.sigmoid(gamma)
    update_gate = jax.nn.sigmoid(beta)
    z2 = jnp.tanh(conv(jnp.concatenate([x, reset_gate * h], axis=1), wc, bc))
    return (1.0 - update_gate) * h + update_gate * z2


def make_params(key, input_dim, hidden_dim, kernel_size):
    """Deterministic init with the PyTorch module's parameter shapes."""
    k = kernel_size
    cin_tot = input_dim + hidden_dim
    k1, k2, k3, k4 = jax.random.split(key, 4)
    wg = jax.random.normal(k1, (2 * hidden_dim, cin_tot, k, k), jnp.float32) * 0.1
    bg = jax.random.normal(k2, (2 * hidden_dim,), jnp.float32) * 0.1
    wc = jax.random.normal(k3, (hidden_dim, cin_tot, k, k), jnp.float32) * 0.1
    bc = jax.random.normal(k4, (hidden_dim,), jnp.float32) * 0.1
    return (wg, bg, wc, bc)


if __name__ == "__main__":
    B, Cin, Chid, H, W, K = 2, 4, 8, 16, 16, 3

    key = jax.random.PRNGKey(0)
    kx, kh, kp = jax.random.split(key, 3)
    # PyTorch convention inputs: x (B, Cin, H, W), cell_state (B, Chid, H, W)
    x = jax.random.normal(kx, (B, Cin, H, W), jnp.float32)
    h = jax.random.normal(kh, (B, Chid, H, W), jnp.float32)
    torch_params = make_params(kp, Cin, Chid, K)

    ref = _reference_conv_gru(x, h, torch_params, K)
    ref_scale = float(jnp.max(jnp.abs(ref)))

    # f32 MXU-operand path: near-exact check against the reference.
    packed_f32 = pack_params(torch_params, Cin, Chid, K, jnp.float32)
    out_f32 = jax.block_until_ready(conv_gru_cell(x, h, packed_f32, K))
    err = float(jnp.max(jnp.abs(out_f32 - ref)))
    assert err < 1e-4, f"f32 path abs err {err}"

    # bf16 MXU-operand path (recommended on v5e/v6e/v7x), f32 accumulation and
    # f32 gate/update elementwise math; relative-error acceptance check.
    packed_bf16 = pack_params(torch_params, Cin, Chid, K, jnp.bfloat16)
    out_bf16 = jax.block_until_ready(conv_gru_cell(x, h, packed_bf16, K))
    rel_err = float(jnp.max(jnp.abs(out_bf16 - ref))) / max(ref_scale, 1e-6)
    assert rel_err < 5e-2, f"bf16 path rel err {rel_err}"

    print("KERNEL_OK")
</pallas_src>

<mosaic_0001>
module attributes {stable_mosaic.version = 11 : i64} {
  func.func @_convgru_kernel(%arg0: i32, %arg1: memref<2x8x256xf32, #tpu.memory_space<vmem>>, %arg2: memref<2x4x256xf32, #tpu.memory_space<vmem>>, %arg3: memref<9x1x512xf32, #tpu.memory_space<vmem>>, %arg4: memref<24x152xf32, #tpu.memory_space<vmem>>, %arg5: memref<8x72xf32, #tpu.memory_space<vmem>>, %arg6: memref<2x8x256xf32, #tpu.memory_space<vmem>>, %arg7: memref<152x512xf32, #tpu.memory_space<vmem>>, %arg8: memref<72x512xf32, #tpu.memory_space<vmem>>) attributes {dimension_semantics = [#tpu.dimension_semantics<arbitrary>], iteration_bounds = array<i64: 1>, scalar_prefetch = 0 : i64, scratch_operands = 2 : i64, tpu.core_type = #tpu.core_type<tc>, window_params = [{pipeline_mode = #tpu.pipeline_mode<synchronous>, transform_indices = @transform_0, window_bounds = array<i64: 2, 8, 256>}, {pipeline_mode = #tpu.pipeline_mode<synchronous>, transform_indices = @transform_1, window_bounds = array<i64: 2, 4, 256>}, {pipeline_mode = #tpu.pipeline_mode<synchronous>, transform_indices = @transform_2, window_bounds = array<i64: 9, 1, 512>}, {pipeline_mode = #tpu.pipeline_mode<synchronous>, transform_indices = @transform_3, window_bounds = array<i64: 24, 152>}, {pipeline_mode = #tpu.pipeline_mode<synchronous>, transform_indices = @transform_4, window_bounds = array<i64: 8, 72>}, {pipeline_mode = #tpu.pipeline_mode<synchronous>, transform_indices = @transform_5, window_bounds = array<i64: 2, 8, 256>}]} {
    %c0 = arith.constant 0 : index
    %c0_0 = arith.constant 0 : index
    %c0_1 = arith.constant 0 : index
    %0 = vector.load %arg1[%c0, %c0_0, %c0_1] : memref<2x8x256xf32, #tpu.memory_space<vmem>>, vector<1x8x256xf32>
    %1 = vector.shape_cast %0 : vector<1x8x256xf32> to vector<8x256xf32>
    %c1 = arith.constant 1 : index
    %c0_2 = arith.constant 0 : index
    %c0_3 = arith.constant 0 : index
    %2 = vector.load %arg1[%c1, %c0_2, %c0_3] : memref<2x8x256xf32, #tpu.memory_space<vmem>>, vector<1x8x256xf32>
    %3 = vector.shape_cast %2 : vector<1x8x256xf32> to vector<8x256xf32>
    %4 = tpu.concatenate %1, %3 in 1 : vector<8x256xf32>, vector<8x256xf32> -> vector<8x512xf32>
    %c0_4 = arith.constant 0 : index
    %c0_5 = arith.constant 0 : index
    %c0_6 = arith.constant 0 : index
    %5 = vector.load %arg2[%c0_4, %c0_5, %c0_6] : memref<2x4x256xf32, #tpu.memory_space<vmem>>, vector<1x4x256xf32>
    %6 = vector.shape_cast %5 : vector<1x4x256xf32> to vector<4x256xf32>
    %c1_7 = arith.constant 1 : index
    %c0_8 = arith.constant 0 : index
    %c0_9 = arith.constant 0 : index
    %7 = vector.load %arg2[%c1_7, %c0_8, %c0_9] : memref<2x4x256xf32, #tpu.memory_space<vmem>>, vector<1x4x256xf32>
    %8 = vector.shape_cast %7 : vector<1x4x256xf32> to vector<4x256xf32>
    %9 = tpu.concatenate %6, %8 in 1 : vector<4x256xf32>, vector<4x256xf32> -> vector<4x512xf32>
    %cst = arith.constant 0.000000e+00 : f32
    %10 = vector.broadcast %cst : f32 to vector<152x512xf32>
    %c0_10 = arith.constant 0 : index
    %c0_11 = arith.constant 0 : index
    %11 = vector.load %arg7[%c0_10, %c0_11] : memref<152x512xf32, #tpu.memory_space<vmem>>, vector<152x512xf32>
    tpu.vector_store %arg7[%c0_10, %c0_11], %10 {strides = array<i32>} : memref<152x512xf32, #tpu.memory_space<vmem>>, vector<152x512xf32>,
    %cst_12 = arith.constant 1.000000e+00 : f32
    %12 = vector.broadcast %cst_12 : f32 to vector<1x512xf32>
    %c144 = arith.constant 144 : index
    %c0_13 = arith.constant 0 : index
    %13 = vector.load %arg7[%c144, %c0_13] : memref<152x512xf32, #tpu.memory_space<vmem>>, vector<1x512xf32>
    tpu.vector_store %arg7[%c144, %c0_13], %12 {strides = array<i32>} : memref<152x512xf32, #tpu.memory_space<vmem>>, vector<1x512xf32>,
    %c17_i32 = arith.constant 17 : i32
    %14 = tpu.dynamic_rotate %4 by %c17_i32 dim 1 : vector<8x512xf32>, i32 -> vector<8x512xf32>
    %c0_14 = arith.constant 0 : index
    %c0_15 = arith.constant 0 : index
    %c0_16 = arith.constant 0 : index
    %15 = vector.load %arg3[%c0_14, %c0_15, %c0_16] : memref<9x1x512xf32, #tpu.memory_space<vmem>>, vector<1x1x512xf32>
    %16 = vector.shape_cast %15 : vector<1x1x512xf32> to vector<1x512xf32>
    %17 = vector.broadcast %16 : vector<1x512xf32> to vector<8x512xf32>
    %18 = arith.mulf %14, %17 : vector<8x512xf32>
    %c0_17 = arith.constant 0 : index
    %c0_18 = arith.constant 0 : index
    %19 = vector.load %arg7[%c0_17, %c0_18] : memref<152x512xf32, #tpu.memory_space<vmem>>, vector<8x512xf32>
    tpu.vector_store %arg7[%c0_17, %c0_18], %18 {strides = array<i32>} : memref<152x512xf32, #tpu.memory_space<vmem>>, vector<8x512xf32>,
    %c17_i32_19 = arith.constant 17 : i32
    %20 = tpu.dynamic_rotate %9 by %c17_i32_19 dim 1 : vector<4x512xf32>, i32 -> vector<4x512xf32>
    %c0_20 = arith.constant 0 : index
    %c0_21 = arith.constant 0 : index
    %c0_22 = arith.constant 0 : index
    %21 = vector.load %arg3[%c0_20, %c0_21, %c0_22] : memref<9x1x512xf32, #tpu.memory_space<vmem>>, vector<1x1x512xf32>
    %22 = vector.shape_cast %21 : vector<1x1x512xf32> to vector<1x512xf32>
    %23 = vector.broadcast %22 : vector<1x512xf32> to vector<4x512xf32>
    %24 = arith.mulf %20, %23 : vector<4x512xf32>
    %c8 = arith.constant 8 : index
    %c0_23 = arith.constant 0 : index
    %25 = vector.load %arg7[%c8, %c0_23] : memref<152x512xf32, #tpu.memory_space<vmem>>, vector<4x512xf32>
    tpu.vector_store %arg7[%c8, %c0_23], %24 {strides = array<i32>} : memref<152x512xf32, #tpu.memory_space<vmem>>, vector<4x512xf32>,
    %c16_i32 = arith.constant 16 : i32
    %26 = tpu.dynamic_rotate %4 by %c16_i32 dim 1 : vector<8x512xf32>, i32 -> vector<8x512xf32>
    %c1_24 = arith.constant 1 : index
    %c0_25 = arith.constant 0 : index
    %c0_26 = arith.constant 0 : index
    %27 = vector.load %arg3[%c1_24, %c0_25, %c0_26] : memref<9x1x512xf32, #tpu.memory_space<vmem>>, vector<1x1x512xf32>
    %28 = vector.shape_cast %27 : vector<1x1x512xf32> to vector<1x512xf32>
    %29 = vector.broadcast %28 : vector<1x512xf32> to vector<8x512xf32>
    %30 = arith.mulf %26, %29 : vector<8x512xf32>
    %c16 = arith.constant 16 : index
    %c0_27 = arith.constant 0 : index
    %31 = vector.load %arg7[%c16, %c0_27] : memref<152x512xf32, #tpu.memory_space<vmem>>, vector<8x512xf32>
    tpu.vector_store %arg7[%c16, %c0_27], %30 {strides = array<i32>} : memref<152x512xf32, #tpu.memory_space<vmem>>, vector<8x512xf32>,
    %c16_i32_28 = arith.constant 16 : i32
    %32 = tpu.dynamic_rotate %9 by %c16_i32_28 dim 1 : vector<4x512xf32>, i32 -> vector<4x512xf32>
    %c1_29 = arith.constant 1 : index
    %c0_30 = arith.constant 0 : index
    %c0_31 = arith.constant 0 : index
    %33 = vector.load %arg3[%c1_29, %c0_30, %c0_31] : memref<9x1x512xf32, #tpu.memory_space<vmem>>, vector<1x1x512xf32>
    %34 = vector.shape_cast %33 : vector<1x1x512xf32> to vector<1x512xf32>
    %35 = vector.broadcast %34 : vector<1x512xf32> to vector<4x512xf32>
    %36 = arith.mulf %32, %35 : vector<4x512xf32>
    %c24 = arith.constant 24 : index
    %c0_32 = arith.constant 0 : index
    %37 = vector.load %arg7[%c24, %c0_32] : memref<152x512xf32, #tpu.memory_space<vmem>>, vector<4x512xf32>
    tpu.vector_store %arg7[%c24, %c0_32], %36 {strides = array<i32>} : memref<152x512xf32, #tpu.memory_space<vmem>>, vector<4x512xf32>,
    %c15_i32 = arith.constant 15 : i32
    %38 = tpu.dynamic_rotate %4 by %c15_i32 dim 1 : vector<8x512xf32>, i32 -> vector<8x512xf32>
    %c2 = arith.constant 2 : index
    %c0_33 = arith.constant 0 : index
    %c0_34 = arith.constant 0 : index
    %39 = vector.load %arg3[%c2, %c0_33, %c0_34] : memref<9x1x512xf32, #tpu.memory_space<vmem>>, vector<1x1x512xf32>
    %40 = vector.shape_cast %39 : vector<1x1x512xf32> to vector<1x512xf32>
    %41 = vector.broadcast %40 : vector<1x512xf32> to vector<8x512xf32>
    %42 = arith.mulf %38, %41 : vector<8x512xf32>
    %c32 = arith.constant 32 : index
    %c0_35 = arith.constant 0 : index
    %43 = vector.load %arg7[%c32, %c0_35] : memref<152x512xf32, #tpu.memory_space<vmem>>, vector<8x512xf32>
    tpu.vector_store %arg7[%c32, %c0_35], %42 {strides = array<i32>} : memref<152x512xf32, #tpu.memory_space<vmem>>, vector<8x512xf32>,
    %c15_i32_36 = arith.constant 15 : i32
    %44 = tpu.dynamic_rotate %9 by %c15_i32_36 dim 1 : vector<4x512xf32>, i32 -> vector<4x512xf32>
    %c2_37 = arith.constant 2 : index
    %c0_38 = arith.constant 0 : index
    %c0_39 = arith.constant 0 : index
    %45 = vector.load %arg3[%c2_37, %c0_38, %c0_39] : memref<9x1x512xf32, #tpu.memory_space<vmem>>, vector<1x1x512xf32>
    %46 = vector.shape_cast %45 : vector<1x1x512xf32> to vector<1x512xf32>
    %47 = vector.broadcast %46 : vector<1x512xf32> to vector<4x512xf32>
    %48 = arith.mulf %44, %47 : vector<4x512xf32>
    %c40 = arith.constant 40 : index
    %c0_40 = arith.constant 0 : index
    %49 = vector.load %arg7[%c40, %c0_40] : memref<152x512xf32, #tpu.memory_space<vmem>>, vector<4x512xf32>
    tpu.vector_store %arg7[%c40, %c0_40], %48 {strides = array<i32>} : memref<152x512xf32, #tpu.memory_space<vmem>>, vector<4x512xf32>,
    %c1_i32 = arith.constant 1 : i32
    %50 = tpu.dynamic_rotate %4 by %c1_i32 dim 1 : vector<8x512xf32>, i32 -> vector<8x512xf32>
    %c3 = arith.constant 3 : index
    %c0_41 = arith.constant 0 : index
    %c0_42 = arith.constant 0 : index
    %51 = vector.load %arg3[%c3, %c0_41, %c0_42] : memref<9x1x512xf32, #tpu.memory_space<vmem>>, vector<1x1x512xf32>
    %52 = vector.shape_cast %51 : vector<1x1x512xf32> to vector<1x512xf32>
    %53 = vector.broadcast %52 : vector<1x512xf32> to vector<8x512xf32>
    %54 = arith.mulf %50, %53 : vector<8x512xf32>
    %c48 = arith.constant 48 : index
    %c0_43 = arith.constant 0 : index
    %55 = vector.load %arg7[%c48, %c0_43] : memref<152x512xf32, #tpu.memory_space<vmem>>, vector<8x512xf32>
    tpu.vector_store %arg7[%c48, %c0_43], %54 {strides = array<i32>} : memref<152x512xf32, #tpu.memory_space<vmem>>, vector<8x512xf32>,
    %c1_i32_44 = arith.constant 1 : i32
    %56 = tpu.dynamic_rotate %9 by %c1_i32_44 dim 1 : vector<4x512xf32>, i32 -> vector<4x512xf32>
    %c3_45 = arith.constant 3 : index
    %c0_46 = arith.constant 0 : index
    %c0_47 = arith.constant 0 : index
    %57 = vector.load %arg3[%c3_45, %c0_46, %c0_47] : memref<9x1x512xf32, #tpu.memory_space<vmem>>, vector<1x1x512xf32>
    %58 = vector.shape_cast %57 : vector<1x1x512xf32> to vector<1x512xf32>
    %59 = vector.broadcast %58 : vector<1x512xf32> to vector<4x512xf32>
    %60 = arith.mulf %56, %59 : vector<4x512xf32>
    %c56 = arith.constant 56 : index
    %c0_48 = arith.constant 0 : index
    %61 = vector.load %arg7[%c56, %c0_48] : memref<152x512xf32, #tpu.memory_space<vmem>>, vector<4x512xf32>
    tpu.vector_store %arg7[%c56, %c0_48], %60 {strides = array<i32>} : memref<152x512xf32, #tpu.memory_space<vmem>>, vector<4x512xf32>,
    %c64 = arith.constant 64 : index
    %c0_49 = arith.constant 0 : index
    %62 = vector.load %arg7[%c64, %c0_49] : memref<152x512xf32, #tpu.memory_space<vmem>>, vector<8x512xf32>
    tpu.vector_store %arg7[%c64, %c0_49], %4 {strides = array<i32>} : memref<152x512xf32, #tpu.memory_space<vmem>>, vector<8x512xf32>,
    %c72 = arith.constant 72 : index
    %c0_50 = arith.constant 0 : index
    %63 = vector.load %arg7[%c72, %c0_50] : memref<152x512xf32, #tpu.memory_space<vmem>>, vector<4x512xf32>
    tpu.vector_store %arg7[%c72, %c0_50], %9 {strides = array<i32>} : memref<152x512xf32, #tpu.memory_space<vmem>>, vector<4x512xf32>,
    %c511_i32 = arith.constant 511 : i32
    %64 = tpu.dynamic_rotate %4 by %c511_i32 dim 1 : vector<8x512xf32>, i32 -> vector<8x512xf32>
    %c5 = arith.constant 5 : index
    %c0_51 = arith.constant 0 : index
    %c0_52 = arith.constant 0 : index
    %65 = vector.load %arg3[%c5, %c0_51, %c0_52] : memref<9x1x512xf32, #tpu.memory_space<vmem>>, vector<1x1x512xf32>
    %66 = vector.shape_cast %65 : vector<1x1x512xf32> to vector<1x512xf32>
    %67 = vector.broadcast %66 : vector<1x512xf32> to vector<8x512xf32>
    %68 = arith.mulf %64, %67 : vector<8x512xf32>
    %c80 = arith.constant 80 : index
    %c0_53 = arith.constant 0 : index
    %69 = vector.load %arg7[%c80, %c0_53] : memref<152x512xf32, #tpu.memory_space<vmem>>, vector<8x512xf32>
    tpu.vector_store %arg7[%c80, %c0_53], %68 {strides = array<i32>} : memref<152x512xf32, #tpu.memory_space<vmem>>, vector<8x512xf32>,
    %c511_i32_54 = arith.constant 511 : i32
    %70 = tpu.dynamic_rotate %9 by %c511_i32_54 dim 1 : vector<4x512xf32>, i32 -> vector<4x512xf32>
    %c5_55 = arith.constant 5 : index
    %c0_56 = arith.constant 0 : index
    %c0_57 = arith.constant 0 : index
    %71 = vector.load %arg3[%c5_55, %c0_56, %c0_57] : memref<9x1x512xf32, #tpu.memory_space<vmem>>, vector<1x1x512xf32>
    %72 = vector.shape_cast %71 : vector<1x1x512xf32> to vector<1x512xf32>
    %73 = vector.broadcast %72 : vector<1x512xf32> to vector<4x512xf32>
    %74 = arith.mulf %70, %73 : vector<4x512xf32>
    %c88 = arith.constant 88 : index
    %c0_58 = arith.constant 0 : index
    %75 = vector.load %arg7[%c88, %c0_58] : memref<152x512xf32, #tpu.memory_space<vmem>>, vector<4x512xf32>
    tpu.vector_store %arg7[%c88, %c0_58], %74 {strides = array<i32>} : memref<152x512xf32, #tpu.memory_space<vmem>>, vector<4x512xf32>,
    %c497_i32 = arith.constant 497 : i32
    %76 = tpu.dynamic_rotate %4 by %c497_i32 dim 1 : vector<8x512xf32>, i32 -> vector<8x512xf32>
    %c6 = arith.constant 6 : index
    %c0_59 = arith.constant 0 : index
    %c0_60 = arith.constant 0 : index
    %77 = vector.load %arg3[%c6, %c0_59, %c0_60] : memref<9x1x512xf32, #tpu.memory_space<vmem>>, vector<1x1x512xf32>
    %78 = vector.shape_cast %77 : vector<1x1x512xf32> to vector<1x512xf32>
    %79 = vector.broadcast %78 : vector<1x512xf32> to vector<8x512xf32>
    %80 = arith.mulf %76, %79 : vector<8x512xf32>
    %c96 = arith.constant 96 : index
    %c0_61 = arith.constant 0 : index
    %81 = vector.load %arg7[%c96, %c0_61] : memref<152x512xf32, #tpu.memory_space<vmem>>, vector<8x512xf32>
    tpu.vector_store %arg7[%c96, %c0_61], %80 {strides = array<i32>} : memref<152x512xf32, #tpu.memory_space<vmem>>, vector<8x512xf32>,
    %c497_i32_62 = arith.constant 497 : i32
    %82 = tpu.dynamic_rotate %9 by %c497_i32_62 dim 1 : vector<4x512xf32>, i32 -> vector<4x512xf32>
    %c6_63 = arith.constant 6 : index
    %c0_64 = arith.constant 0 : index
    %c0_65 = arith.constant 0 : index
    %83 = vector.load %arg3[%c6_63, %c0_64, %c0_65] : memref<9x1x512xf32, #tpu.memory_space<vmem>>, vector<1x1x512xf32>
    %84 = vector.shape_cast %83 : vector<1x1x512xf32> to vector<1x512xf32>
    %85 = vector.broadcast %84 : vector<1x512xf32> to vector<4x512xf32>
    %86 = arith.mulf %82, %85 : vector<4x512xf32>
    %c104 = arith.constant 104 : index
    %c0_66 = arith.constant 0 : index
    %87 = vector.load %arg7[%c104, %c0_66] : memref<152x512xf32, #tpu.memory_space<vmem>>, vector<4x512xf32>
    tpu.vector_store %arg7[%c104, %c0_66], %86 {strides = array<i32>} : memref<152x512xf32, #tpu.memory_space<vmem>>, vector<4x512xf32>,
    %c496_i32 = arith.constant 496 : i32
    %88 = tpu.dynamic_rotate %4 by %c496_i32 dim 1 : vector<8x512xf32>, i32 -> vector<8x512xf32>
    %c7 = arith.constant 7 : index
    %c0_67 = arith.constant 0 : index
    %c0_68 = arith.constant 0 : index
    %89 = vector.load %arg3[%c7, %c0_67, %c0_68] : memref<9x1x512xf32, #tpu.memory_space<vmem>>, vector<1x1x512xf32>
    %90 = vector.shape_cast %89 : vector<1x1x512xf32> to vector<1x512xf32>
    %91 = vector.broadcast %90 : vector<1x512xf32> to vector<8x512xf32>
    %92 = arith.mulf %88, %91 : vector<8x512xf32>
    %c112 = arith.constant 112 : index
    %c0_69 = arith.constant 0 : index
    %93 = vector.load %arg7[%c112, %c0_69] : memref<152x512xf32, #tpu.memory_space<vmem>>, vector<8x512xf32>
    tpu.vector_store %arg7[%c112, %c0_69], %92 {strides = array<i32>} : memref<152x512xf32, #tpu.memory_space<vmem>>, vector<8x512xf32>,
    %c496_i32_70 = arith.constant 496 : i32
    %94 = tpu.dynamic_rotate %9 by %c496_i32_70 dim 1 : vector<4x512xf32>, i32 -> vector<4x512xf32>
    %c7_71 = arith.constant 7 : index
    %c0_72 = arith.constant 0 : index
    %c0_73 = arith.constant 0 : index
    %95 = vector.load %arg3[%c7_71, %c0_72, %c0_73] : memref<9x1x512xf32, #tpu.memory_space<vmem>>, vector<1x1x512xf32>
    %96 = vector.shape_cast %95 : vector<1x1x512xf32> to vector<1x512xf32>
    %97 = vector.broadcast %96 : vector<1x512xf32> to vector<4x512xf32>
    %98 = arith.mulf %94, %97 : vector<4x512xf32>
    %c120 = arith.constant 120 : index
    %c0_74 = arith.constant 0 : index
    %99 = vector.load %arg7[%c120, %c0_74] : memref<152x512xf32, #tpu.memory_space<vmem>>, vector<4x512xf32>
    tpu.vector_store %arg7[%c120, %c0_74], %98 {strides = array<i32>} : memref<152x512xf32, #tpu.memory_space<vmem>>, vector<4x512xf32>,
    %c495_i32 = arith.constant 495 : i32
    %100 = tpu.dynamic_rotate %4 by %c495_i32 dim 1 : vector<8x512xf32>, i32 -> vector<8x512xf32>
    %c8_75 = arith.constant 8 : index
    %c0_76 = arith.constant 0 : index
    %c0_77 = arith.constant 0 : index
    %101 = vector.load %arg3[%c8_75, %c0_76, %c0_77] : memref<9x1x512xf32, #tpu.memory_space<vmem>>, vector<1x1x512xf32>
    %102 = vector.shape_cast %101 : vector<1x1x512xf32> to vector<1x512xf32>
    %103 = vector.broadcast %102 : vector<1x512xf32> to vector<8x512xf32>
    %104 = arith.mulf %100, %103 : vector<8x512xf32>
    %c128 = arith.constant 128 : index
    %c0_78 = arith.constant 0 : index
    %105 = vector.load %arg7[%c128, %c0_78] : memref<152x512xf32, #tpu.memory_space<vmem>>, vector<8x512xf32>
    tpu.vector_store %arg7[%c128, %c0_78], %104 {strides = array<i32>} : memref<152x512xf32, #tpu.memory_space<vmem>>, vector<8x512xf32>,
    %c495_i32_79 = arith.constant 495 : i32
    %106 = tpu.dynamic_rotate %9 by %c495_i32_79 dim 1 : vector<4x512xf32>, i32 -> vector<4x512xf32>
    %c8_80 = arith.constant 8 : index
    %c0_81 = arith.constant 0 : index
    %c0_82 = arith.constant 0 : index
    %107 = vector.load %arg3[%c8_80, %c0_81, %c0_82] : memref<9x1x512xf32, #tpu.memory_space<vmem>>, vector<1x1x512xf32>
    %108 = vector.shape_cast %107 : vector<1x1x512xf32> to vector<1x512xf32>
    %109 = vector.broadcast %108 : vector<1x512xf32> to vector<4x512xf32>
    %110 = arith.mulf %106, %109 : vector<4x512xf32>
    %c136 = arith.constant 136 : index
    %c0_83 = arith.constant 0 : index
    %111 = vector.load %arg7[%c136, %c0_83] : memref<152x512xf32, #tpu.memory_space<vmem>>, vector<4x512xf32>
    tpu.vector_store %arg7[%c136, %c0_83], %110 {strides = array<i32>} : memref<152x512xf32, #tpu.memory_space<vmem>>, vector<4x512xf32>,
    %c0_84 = arith.constant 0 : index
    %c0_85 = arith.constant 0 : index
    %112 = vector.load %arg4[%c0_84, %c0_85] : memref<24x152xf32, #tpu.memory_space<vmem>>, vector<24x152xf32>
    %c0_86 = arith.constant 0 : index
    %c0_87 = arith.constant 0 : index
    %113 = vector.load %arg7[%c0_86, %c0_87] : memref<152x512xf32, #tpu.memory_space<vmem>>, vector<152x512xf32>
    %cst_88 = arith.constant dense<0.000000e+00> : vector<24x512xf32>
    %114 = tpu.matmul %112, %113, %cst_88 {dimension_numbers = #tpu.dot_dimension_numbers<[1], [0], [0], [1], [0, 0, 1, 1], [], []>} : vector<24x152xf32>, vector<152x512xf32>, vector<24x512xf32> -> vector<24x512xf32>
    %115 = vector.extract_strided_slice %114 {offsets = [0, 0], sizes = [8, 512], strides = [1, 1]} : vector<24x512xf32> to vector<8x512xf32>
    %116 = arith.negf %115 : vector<8x512xf32>
    %117 = math.exp %116 : vector<8x512xf32>
    %cst_89 = arith.constant 1.000000e+00 : f32
    %118 = vector.broadcast %cst_89 : f32 to vector<8x512xf32>
    %119 = arith.addf %118, %117 : vector<8x512xf32>
    %120 = arith.divf %118, %119 : vector<8x512xf32>
    %121 = vector.extract_strided_slice %114 {offsets = [8, 0], sizes = [8, 512], strides = [1, 1]} : vector<24x512xf32> to vector<8x512xf32>
    %122 = arith.negf %121 : vector<8x512xf32>
    %123 = math.exp %122 : vector<8x512xf32>
    %cst_90 = arith.constant 1.000000e+00 : f32
    %124 = vector.broadcast %cst_90 : f32 to vector<8x512xf32>
    %125 = arith.addf %124, %123 : vector<8x512xf32>
    %126 = arith.divf %124, %125 : vector<8x512xf32>
    %127 = vector.extract_strided_slice %114 {offsets = [16, 0], sizes = [8, 512], strides = [1, 1]} : vector<24x512xf32> to vector<8x512xf32>
    %128 = arith.mulf %120, %4 : vector<8x512xf32>
    %c17_i32_91 = arith.constant 17 : i32
    %129 = tpu.dynamic_rotate %128 by %c17_i32_91 dim 1 : vector<8x512xf32>, i32 -> vector<8x512xf32>
    %c0_92 = arith.constant 0 : index
    %c0_93 = arith.constant 0 : index
    %c0_94 = arith.constant 0 : index
    %130 = vector.load %arg3[%c0_92, %c0_93, %c0_94] : memref<9x1x512xf32, #tpu.memory_space<vmem>>, vector<1x1x512xf32>
    %131 = vector.shape_cast %130 : vector<1x1x512xf32> to vector<1x512xf32>
    %132 = vector.broadcast %131 : vector<1x512xf32> to vector<8x512xf32>
    %133 = arith.mulf %129, %132 : vector<8x512xf32>
    %c0_95 = arith.constant 0 : index
    %c0_96 = arith.constant 0 : index
    %134 = vector.load %arg8[%c0_95, %c0_96] : memref<72x512xf32, #tpu.memory_space<vmem>>, vector<8x512xf32>
    tpu.vector_store %arg8[%c0_95, %c0_96], %133 {strides = array<i32>} : memref<72x512xf32, #tpu.memory_space<vmem>>, vector<8x512xf32>,
    %c16_i32_97 = arith.constant 16 : i32
    %135 = tpu.dynamic_rotate %128 by %c16_i32_97 dim 1 : vector<8x512xf32>, i32 -> vector<8x512xf32>
    %c1_98 = arith.constant 1 : index
    %c0_99 = arith.constant 0 : index
    %c0_100 = arith.constant 0 : index
    %136 = vector.load %arg3[%c1_98, %c0_99, %c0_100] : memref<9x1x512xf32, #tpu.memory_space<vmem>>, vector<1x1x512xf32>
    %137 = vector.shape_cast %136 : vector<1x1x512xf32> to vector<1x512xf32>
    %138 = vector.broadcast %137 : vector<1x512xf32> to vector<8x512xf32>
    %139 = arith.mulf %135, %138 : vector<8x512xf32>
    %c8_101 = arith.constant 8 : index
    %c0_102 = arith.constant 0 : index
    %140 = vector.load %arg8[%c8_101, %c0_102] : memref<72x512xf32, #tpu.memory_space<vmem>>, vector<8x512xf32>
    tpu.vector_store %arg8[%c8_101, %c0_102], %139 {strides = array<i32>} : memref<72x512xf32, #tpu.memory_space<vmem>>, vector<8x512xf32>,
    %c15_i32_103 = arith.constant 15 : i32
    %141 = tpu.dynamic_rotate %128 by %c15_i32_103 dim 1 : vector<8x512xf32>, i32 -> vector<8x512xf32>
    %c2_104 = arith.constant 2 : index
    %c0_105 = arith.constant 0 : index
    %c0_106 = arith.constant 0 : index
    %142 = vector.load %arg3[%c2_104, %c0_105, %c0_106] : memref<9x1x512xf32, #tpu.memory_space<vmem>>, vector<1x1x512xf32>
    %143 = vector.shape_cast %142 : vector<1x1x512xf32> to vector<1x512xf32>
    %144 = vector.broadcast %143 : vector<1x512xf32> to vector<8x512xf32>
    %145 = arith.mulf %141, %144 : vector<8x512xf32>
    %c16_107 = arith.constant 16 : index
    %c0_108 = arith.constant 0 : index
    %146 = vector.load %arg8[%c16_107, %c0_108] : memref<72x512xf32, #tpu.memory_space<vmem>>, vector<8x512xf32>
    tpu.vector_store %arg8[%c16_107, %c0_108], %145 {strides = array<i32>} : memref<72x512xf32, #tpu.memory_space<vmem>>, vector<8x512xf32>,
    %c1_i32_109 = arith.constant 1 : i32
    %147 = tpu.dynamic_rotate %128 by %c1_i32_109 dim 1 : vector<8x512xf32>, i32 -> vector<8x512xf32>
    %c3_110 = arith.constant 3 : index
    %c0_111 = arith.constant 0 : index
    %c0_112 = arith.constant 0 : index
    %148 = vector.load %arg3[%c3_110, %c0_111, %c0_112] : memref<9x1x512xf32, #tpu.memory_space<vmem>>, vector<1x1x512xf32>
    %149 = vector.shape_cast %148 : vector<1x1x512xf32> to vector<1x512xf32>
    %150 = vector.broadcast %149 : vector<1x512xf32> to vector<8x512xf32>
    %151 = arith.mulf %147, %150 : vector<8x512xf32>
    %c24_113 = arith.constant 24 : index
    %c0_114 = arith.constant 0 : index
    %152 = vector.load %arg8[%c24_113, %c0_114] : memref<72x512xf32, #tpu.memory_space<vmem>>, vector<8x512xf32>
    tpu.vector_store %arg8[%c24_113, %c0_114], %151 {strides = array<i32>} : memref<72x512xf32, #tpu.memory_space<vmem>>, vector<8x512xf32>,
    %c32_115 = arith.constant 32 : index
    %c0_116 = arith.constant 0 : index
    %153 = vector.load %arg8[%c32_115, %c0_116] : memref<72x512xf32, #tpu.memory_space<vmem>>, vector<8x512xf32>
    tpu.vector_store %arg8[%c32_115, %c0_116], %128 {strides = array<i32>} : memref<72x512xf32, #tpu.memory_space<vmem>>, vector<8x512xf32>,
    %c511_i32_117 = arith.constant 511 : i32
    %154 = tpu.dynamic_rotate %128 by %c511_i32_117 dim 1 : vector<8x512xf32>, i32 -> vector<8x512xf32>
    %c5_118 = arith.constant 5 : index
    %c0_119 = arith.constant 0 : index
    %c0_120 = arith.constant 0 : index
    %155 = vector.load %arg3[%c5_118, %c0_119, %c0_120] : memref<9x1x512xf32, #tpu.memory_space<vmem>>, vector<1x1x512xf32>
    %156 = vector.shape_cast %155 : vector<1x1x512xf32> to vector<1x512xf32>
    %157 = vector.broadcast %156 : vector<1x512xf32> to vector<8x512xf32>
    %158 = arith.mulf %154, %157 : vector<8x512xf32>
    %c40_121 = arith.constant 40 : index
    %c0_122 = arith.constant 0 : index
    %159 = vector.load %arg8[%c40_121, %c0_122] : memref<72x512xf32, #tpu.memory_space<vmem>>, vector<8x512xf32>
    tpu.vector_store %arg8[%c40_121, %c0_122], %158 {strides = array<i32>} : memref<72x512xf32, #tpu.memory_space<vmem>>, vector<8x512xf32>,
    %c497_i32_123 = arith.constant 497 : i32
    %160 = tpu.dynamic_rotate %128 by %c497_i32_123 dim 1 : vector<8x512xf32>, i32 -> vector<8x512xf32>
    %c6_124 = arith.constant 6 : index
    %c0_125 = arith.constant 0 : index
    %c0_126 = arith.constant 0 : index
    %161 = vector.load %arg3[%c6_124, %c0_125, %c0_126] : memref<9x1x512xf32, #tpu.memory_space<vmem>>, vector<1x1x512xf32>
    %162 = vector.shape_cast %161 : vector<1x1x512xf32> to vector<1x512xf32>
    %163 = vector.broadcast %162 : vector<1x512xf32> to vector<8x512xf32>
    %164 = arith.mulf %160, %163 : vector<8x512xf32>
    %c48_127 = arith.constant 48 : index
    %c0_128 = arith.constant 0 : index
    %165 = vector.load %arg8[%c48_127, %c0_128] : memref<72x512xf32, #tpu.memory_space<vmem>>, vector<8x512xf32>
    tpu.vector_store %arg8[%c48_127, %c0_128], %164 {strides = array<i32>} : memref<72x512xf32, #tpu.memory_space<vmem>>, vector<8x512xf32>,
    %c496_i32_129 = arith.constant 496 : i32
    %166 = tpu.dynamic_rotate %128 by %c496_i32_129 dim 1 : vector<8x512xf32>, i32 -> vector<8x512xf32>
    %c7_130 = arith.constant 7 : index
    %c0_131 = arith.constant 0 : index
    %c0_132 = arith.constant 0 : index
    %167 = vector.load %arg3[%c7_130, %c0_131, %c0_132] : memref<9x1x512xf32, #tpu.memory_space<vmem>>, vector<1x1x512xf32>
    %168 = vector.shape_cast %167 : vector<1x1x512xf32> to vector<1x512xf32>
    %169 = vector.broadcast %168 : vector<1x512xf32> to vector<8x512xf32>
    %170 = arith.mulf %166, %169 : vector<8x512xf32>
    %c56_133 = arith.constant 56 : index
    %c0_134 = arith.constant 0 : index
    %171 = vector.load %arg8[%c56_133, %c0_134] : memref<72x512xf32, #tpu.memory_space<vmem>>, vector<8x512xf32>
    tpu.vector_store %arg8[%c56_133, %c0_134], %170 {strides = array<i32>} : memref<72x512xf32, #tpu.memory_space<vmem>>, vector<8x512xf32>,
    %c495_i32_135 = arith.constant 495 : i32
    %172 = tpu.dynamic_rotate %128 by %c495_i32_135 dim 1 : vector<8x512xf32>, i32 -> vector<8x512xf32>
    %c8_136 = arith.constant 8 : index
    %c0_137 = arith.constant 0 : index
    %c0_138 = arith.constant 0 : index
    %173 = vector.load %arg3[%c8_136, %c0_137, %c0_138] : memref<9x1x512xf32, #tpu.memory_space<vmem>>, vector<1x1x512xf32>
    %174 = vector.shape_cast %173 : vector<1x1x512xf32> to vector<1x512xf32>
    %175 = vector.broadcast %174 : vector<1x512xf32> to vector<8x512xf32>
    %176 = arith.mulf %172, %175 : vector<8x512xf32>
    %c64_139 = arith.constant 64 : index
    %c0_140 = arith.constant 0 : index
    %177 = vector.load %arg8[%c64_139, %c0_140] : memref<72x512xf32, #tpu.memory_space<vmem>>, vector<8x512xf32>
    tpu.vector_store %arg8[%c64_139, %c0_140], %176 {strides = array<i32>} : memref<72x512xf32, #tpu.memory_space<vmem>>, vector<8x512xf32>,
    %c0_141 = arith.constant 0 : index
    %c0_142 = arith.constant 0 : index
    %178 = vector.load %arg5[%c0_141, %c0_142] : memref<8x72xf32, #tpu.memory_space<vmem>>, vector<8x72xf32>
    %c0_143 = arith.constant 0 : index
    %c0_144 = arith.constant 0 : index
    %179 = vector.load %arg8[%c0_143, %c0_144] : memref<72x512xf32, #tpu.memory_space<vmem>>, vector<72x512xf32>
    %cst_145 = arith.constant dense<0.000000e+00> : vector<8x512xf32>
    %180 = tpu.matmul %178, %179, %cst_145 {dimension_numbers = #tpu.dot_dimension_numbers<[1], [0], [0], [1], [0, 0, 1, 1], [], []>} : vector<8x72xf32>, vector<72x512xf32>, vector<8x512xf32> -> vector<8x512xf32>
    %181 = arith.addf %127, %180 : vector<8x512xf32>
    %182 = math.tanh %181 : vector<8x512xf32>
    %183 = arith.subf %182, %4 : vector<8x512xf32>
    %184 = arith.mulf %126, %183 : vector<8x512xf32>
    %185 = arith.addf %4, %184 : vector<8x512xf32>
    %186 = vector.extract_strided_slice %185 {offsets = [0, 0], sizes = [8, 256], strides = [1, 1]} : vector<8x512xf32> to vector<8x256xf32>
    %c0_146 = arith.constant 0 : index
    %c0_147 = arith.constant 0 : index
    %c0_148 = arith.constant 0 : index
    %187 = vector.load %arg6[%c0_146, %c0_147, %c0_148] : memref<2x8x256xf32, #tpu.memory_space<vmem>>, vector<1x8x256xf32>
    %188 = vector.shape_cast %187 : vector<1x8x256xf32> to vector<8x256xf32>
    %189 = vector.shape_cast %186 : vector<8x256xf32> to vector<1x8x256xf32>
    tpu.vector_store %arg6[%c0_146, %c0_147, %c0_148], %189 {strides = array<i32>} : memref<2x8x256xf32, #tpu.memory_space<vmem>>, vector<1x8x256xf32>,
    %190 = vector.extract_strided_slice %185 {offsets = [0, 256], sizes = [8, 256], strides = [1, 1]} : vector<8x512xf32> to vector<8x256xf32>
    %c1_149 = arith.constant 1 : index
    %c0_150 = arith.constant 0 : index
    %c0_151 = arith.constant 0 : index
    %191 = vector.load %arg6[%c1_149, %c0_150, %c0_151] : memref<2x8x256xf32, #tpu.memory_space<vmem>>, vector<1x8x256xf32>
    %192 = vector.shape_cast %191 : vector<1x8x256xf32> to vector<8x256xf32>
    %193 = vector.shape_cast %190 : vector<8x256xf32> to vector<1x8x256xf32>
    tpu.vector_store %arg6[%c1_149, %c0_150, %c0_151], %193 {strides = array<i32>} : memref<2x8x256xf32, #tpu.memory_space<vmem>>, vector<1x8x256xf32>,
    return
  }
  func.func @transform_0(%arg0: i32) -> (i32, i32, i32) {
    %c0_i32 = arith.constant 0 : i32
    %c0_i32_0 = arith.constant 0 : i32
    %c0_i32_1 = arith.constant 0 : i32
    %c0_i32_2 = arith.constant 0 : i32
    return %c0_i32, %c0_i32_0, %c0_i32_1 : i32, i32, i32
  }
  func.func @transform_1(%arg0: i32) -> (i32, i32, i32) {
    %c0_i32 = arith.constant 0 : i32
    %c0_i32_0 = arith.constant 0 : i32
    %c0_i32_1 = arith.constant 0 : i32
    %c0_i32_2 = arith.constant 0 : i32
    return %c0_i32, %c0_i32_0, %c0_i32_1 : i32, i32, i32
  }
  func.func @transform_2(%arg0: i32) -> (i32, i32, i32) {
    %c0_i32 = arith.constant 0 : i32
    %c0_i32_0 = arith.constant 0 : i32
    %c0_i32_1 = arith.constant 0 : i32
    %c0_i32_2 = arith.constant 0 : i32
    return %c0_i32, %c0_i32_0, %c0_i32_1 : i32, i32, i32
  }
  func.func @transform_3(%arg0: i32) -> (i32, i32) {
    %c0_i32 = arith.constant 0 : i32
    %c0_i32_0 = arith.constant 0 : i32
    %c0_i32_1 = arith.constant 0 : i32
    return %c0_i32, %c0_i32_0 : i32, i32
  }
  func.func @transform_4(%arg0: i32) -> (i32, i32) {
    %c0_i32 = arith.constant 0 : i32
    %c0_i32_0 = arith.constant 0 : i32
    %c0_i32_1 = arith.constant 0 : i32
    return %c0_i32, %c0_i32_0 : i32, i32
  }
  func.func @transform_5(%arg0: i32) -> (i32, i32, i32) {
    %c0_i32 = arith.constant 0 : i32
    %c0_i32_0 = arith.constant 0 : i32
    %c0_i32_1 = arith.constant 0 : i32
    %c0_i32_2 = arith.constant 0 : i32
    return %c0_i32, %c0_i32_0, %c0_i32_1 : i32, i32, i32
  }
}

</mosaic_0001>

<bundles_post_ra>
// kernel: tpu_custom_call.1
= control target key start
LH: loop header
LB: loop body
LE: loop exit
PB: predicated region body
PF: predicated region fallthrough
CT: control target
= control target key end

     0   :  { %10 = vsyncpa [#allocation5], 0  ;;  %s2784_s0 = inlined_call_operand.hbm [shape: f32[2,8,256], index: 0, kind: input, shape index: {}, may-alias: {0,5}]   ;;  %s2785_s1 = inlined_call_operand.vmem [shape: f32[2,4,256], index: 1, kind: input, shape index: {}]   ;;  %s2786_s2 = inlined_call_operand.hbm [shape: f32[9,1,512], index: 2, kind: input, shape index: {}]   ;;  %s2787_s3 = inlined_call_operand.vmem [shape: f32[24,152], index: 3, kind: input, shape index: {}]   ;;  %s2788_s4 = inlined_call_operand.vmem [shape: f32[8,72], index: 4, kind: input, shape index: {}]   ;;  %s2789_s5 = inlined_call_operand.hbm [shape: f32[2,8,256], index: 5, kind: output, shape index: {}, may-alias: {0,5}]  }
   0x1   :  { %11 = vsyncpa [#allocation8], 0 }
   0x2   :  { %12 = vsyncpa [#allocation6], 0  ;;  %s1978_s18 = smov [#allocation4]   ;;  %s1906_s22 = scalar_lea.hbm %s2784_s0, 512 }
   0x3   :  { %s18_s19 = sshll.u32 %s1978_s18, 4  ;;  %p1907_p0 = scmp.ne.s32.totalorder %s2784_s0, %s1906_s22  ;;  %s19_s19 = int_to_ptr.vmem [resolvable:$true] %s18_s19 }
   0x4   :  { %p1910_p1 = scmp.lt.u32.totalorder %s1906_s22, %s2784_s0 }
   0x6   :  { %p1912_p2 = pnand %p1910_p1, %p1907_p0 }
   0x8   :  { %1915 = shalt.err (!%p1912_p2)
}
   0x9   :  { %s1916_s27 = scalar_lea.vmem %s19_s19, 512  ;;  %p1921_p4 = scmp.lt.s32.totalorder %s19_s19, %s19_s19 }
   0xa   :  { %p1917_p3 = scmp.ne.s32.totalorder %s19_s19, %s1916_s27  ;;  %p1922_p5 = scmp.lt.s32.totalorder %s1916_s27, %s1916_s27 }
   0xc   :  { %p1923_p6 = por %p1922_p5, %p1921_p4 }
   0xe   :  { %p1924_p7 = pnand %p1923_p6, %p1917_p3 }
  0x10   :  { %1927 = shalt.err (!%p1924_p7)
}
  0x11   :  { %s1979_s28 = smov 256   ;;  %s1980_s29 = smov 16  }
  0x12   :  { %24 = dma.hbm_to_vmem [thread:$0]  %s2784_s0, 512, %s19_s19, [#allocation5], %s1979_s28, %s1979_s28, %s1980_s29  }
  0x13   :  { %s1981_s7 = smov [#allocation7]   ;;  %s1928_s11 = scalar_lea.hbm %s2786_s2, 576 }
  0x14   :  { %s32_s8 = sshll.u32 %s1981_s7, 4  ;;  %p1929_p8 = scmp.ne.s32.totalorder %s2786_s2, %s1928_s11  ;;  %s33_s8 = int_to_ptr.vmem [resolvable:$true] %s32_s8 }
  0x15   :  { %p1932_p9 = scmp.lt.u32.totalorder %s1928_s11, %s2786_s2 }
  0x17   :  { %p1934_p10 = pnand %p1932_p9, %p1929_p8 }
  0x19   :  { %1937 = shalt.err (!%p1934_p10)
}
  0x1a   :  { %s1938_s16 = scalar_lea.vmem %s33_s8, 576  ;;  %p1943_p12 = scmp.lt.s32.totalorder %s33_s8, %s33_s8 }
  0x1b   :  { %p1939_p11 = scmp.ne.s32.totalorder %s33_s8, %s1938_s16  ;;  %p1944_p13 = scmp.lt.s32.totalorder %s1938_s16, %s1938_s16 }
  0x1d   :  { %p1945_p0 = por %p1944_p13, %p1943_p12 }
  0x1f   :  { %p1946_p1 = pnand %p1945_p0, %p1939_p11 }
  0x21   :  { %1949 = shalt.err (!%p1946_p1)
}
  0x22   :  { %s1982_s0 = smov 64   ;;  %s1983_s17 = smov 4  }
  0x23   :  { %38 = dma.hbm_to_vmem [thread:$0]  %s2786_s2, 576, %s33_s8, [#allocation8], %s1982_s0, %s1982_s0, %s1983_s17  }
  0x24   :  { %1972 = dma.done.wait [#allocation5], 512  }
  0x25   :  { %1973 = vsyncadd [#allocation5], 4294966784 }
  0x26   :  { %1974 = dma.done.wait [#allocation8], 576  }
  0x27   :  { %1975 = vsyncadd [#allocation8], 4294966720  ;;  %v1984_v0 = vmov 0.0   ;;  %v2091_v1 = vld [vmem:[#allocation4 + $0x10] sm:$0xff]  ;;  %v2093_v2 = vld [vmem:[#allocation4] sm:$0xff]  ;;  %s1985_s2 = smov 17   ;;  %v139_v9 = vlaneseq }
  0x28   :  { %67 = vst [vmem:[#allocation2 + $0x20] sm:$0xff] %v1984_v0  ;;  %68 = vst [vmem:[#allocation2 + $0x28] sm:$0xff] %v1984_v0  ;;  %v2095_v3 = vld [vmem:[#allocation4 + $0x18] sm:$0xff]  ;;  %150 = vrot.lane.b32.xlu1 %v2091_v1, %s1985_s2  ;;  %146 = vrot.lane.b32.xlu0 %v2093_v2, %s1985_s2  ;;  %v2101_v4 = vld [vmem:[#allocation4 + $0x8] sm:$0xff]  ;;  %s1987_s24 = smov 1   ;;  %s1988_s25 = smov 127  }
  0x29   :  { %69 = vst [vmem:[#allocation2 + $0x30] sm:$0xff] %v1984_v0  ;;  %70 = vst [vmem:[#allocation2 + $0x38] sm:$0xff] %v1984_v0  ;;  %v2106_v5 = vld [vmem:[%s2785_s1] sm:$0xff]  ;;  %v2111_v6 = vld [vmem:[%s2785_s1 + $0x8] sm:$0xff]  ;;  %s1986_s1 = smov 15   ;;  %s1989_s26 = smov 113  }
  0x2a   :  { %75 = vst [vmem:[#allocation2 + $0x60] sm:$0xff] %v1984_v0  ;;  %76 = vst [vmem:[#allocation2 + $0x68] sm:$0xff] %v1984_v0  ;;  %v2118_v7 = vcombine.high %v2106_v5, %v2106_v5  ;;  %v2122_v8 = vcombine.high %v2111_v6, %v2111_v6  ;;  %s1990_s27 = smov 112   ;;  %v164_v10 = vshrl.u32 %v139_v9, 7  ;;  %s1991_s30 = smov 111   ;;  %v2243_v12 = vand.u32 127, %v139_v9 }
  0x2b   :  { %77 = vst [vmem:[#allocation2 + $0x70] sm:$0xff] %v1984_v0  ;;  %78 = vst [vmem:[#allocation2 + $0x78] sm:$0xff] %v1984_v0  ;;  %v161_v13 = vld [vmem:[#allocation7] sm:$0xf]  ;;  %vm141_vm1 = vcmp.lt.s32.totalorder %v139_v9, 512  ;;  %v1992_v37 = vmov 1.0  }
  0x2c   :  { %83 = vst [vmem:[#allocation2 + $0xa0] sm:$0xff] %v1984_v0  ;;  %84 = vst [vmem:[#allocation2 + $0xa8] sm:$0xff] %v1984_v0  ;;  %152 = vrot.lane.b32.xlu1 %v2095_v3, %s1985_s2  ;;  %148 = vrot.lane.b32.xlu0 %v2101_v4, %s1985_s2  ;;  %v2237_v11 = vsub.s32 0, %v164_v10  ;;  %v2245_v14 = vsub.s32 3, %v164_v10  ;;  %v2247_v15 = vsub.s32 1, %v164_v10  ;;  %v2249_v16 = vsub.s32 2, %v164_v10 }
  0x2d   :  { %85 = vst [vmem:[#allocation2 + $0xb0] sm:$0xff] %v1984_v0  ;;  %86 = vst [vmem:[#allocation2 + $0xb8] sm:$0xff] %v1984_v0  ;;  %v203_v20 = vld [vmem:[#allocation7] sm:$0xf]  ;;  %vm156_vm0 = vcmp.lt.s32.totalorder %v2243_v12, 17  ;;  %vm241_vm2 = vcmp.lt.s32.totalorder %v2243_v12, 16 }
  0x2e   :  { %91 = vst [vmem:[#allocation2 + $0xe0] sm:$0xff] %v1984_v0  ;;  %92 = vst [vmem:[#allocation2 + $0xe8] sm:$0xff] %v1984_v0  ;;  %v166_v19 = vrot.slane %v161_v13, %v2237_v11  ;;  %v178_v21 = vrot.slane %v161_v13, %v2245_v14  ;;  %v170_v22 = vrot.slane %v161_v13, %v2247_v15  ;;  %v247_v43 = vld [vmem:[#allocation7 + $0x4] sm:$0xf]  ;;  %v844_v53 = vld [vmem:[%s2787_s3 + $0x8] sm:$0xff]  ;;  %vm925_vm3 = vcmask 195584  }
  0x2f   :  { %93 = vst [vmem:[#allocation2 + $0xf0] sm:$0xff] %v1984_v0  ;;  %94 = vst [vmem:[#allocation2 + $0xf8] sm:$0xff] %v1984_v0  ;;  %v174_v23 = vrot.slane %v161_v13, %v2249_v16  ;;  %v212_v26 = vrot.slane %v203_v20, %v2247_v15  ;;  %v208_v40 = vrot.slane %v203_v20, %v2237_v11  ;;  %1720 = vmatprep.mubr.msk.f32.mxu0 %vm925_vm3, %v844_v53  ;;  %v289_v62 = vld [vmem:[#allocation7 + $0x4] sm:$0xf]  ;;  %vm1530_vm10 = vcmask 588800  }
  0x30   :  { %99 = vst [vmem:[#allocation2 + $0x120] sm:$0xff] %v1984_v0  ;;  %100 = vst [vmem:[#allocation2 + $0x128] sm:$0xff] %v1984_v0  ;;  %193 = vrot.lane.b32.xlu1 %v2118_v7, %s1985_s2  ;;  %191 = vrot.lane.b32.xlu0 %v2106_v5, %s1985_s2  ;;  %v216_v41 = vrot.slane %v203_v20, %v2249_v16  ;;  %v220_v42 = vrot.slane %v203_v20, %v2245_v14  ;;  %vm327_vm4 = vcmp.lt.s32.totalorder %v2243_v12, 15 }
  0x31   :  { %101 = vst [vmem:[#allocation2 + $0x130] sm:$0xff] %v1984_v0  ;;  %102 = vst [vmem:[#allocation2 + $0x138] sm:$0xff] %v1984_v0  ;;  %v256_v52 = vrot.slane %v247_v43, %v2247_v15  ;;  %1723 = vmatprep.mubr.msk.f32.mxu1 %vm925_vm3, %v844_v53  ;;  %v252_v58 = vrot.slane %v247_v43, %v2237_v11  ;;  %v260_v59 = vrot.slane %v247_v43, %v2249_v16 }
  0x32   :  { %107 = vst [vmem:[#allocation2 + $0x160] sm:$0xff] %v1984_v0  ;;  %108 = vst [vmem:[#allocation2 + $0x168] sm:$0xff] %v1984_v0  ;;  %v264_v60 = vrot.slane %v247_v43, %v2245_v14  ;;  %vm413_vm5 = vcmp.lt.s32.totalorder %v2243_v12, 1  ;;  %vm507_vm6 = vcmp.lt.s32.totalorder %v2243_v12, 127  ;;  %vm593_vm7 = vcmp.lt.s32.totalorder %v2243_v12, 113 }
  0x33   :  { %109 = vst [vmem:[#allocation2 + $0x170] sm:$0xff] %v1984_v0  ;;  %110 = vst [vmem:[#allocation2 + $0x178] sm:$0xff] %v1984_v0  ;;  %vm679_vm8 = vcmp.lt.s32.totalorder %v2243_v12, 112  ;;  %vm765_vm9 = vcmp.lt.s32.totalorder %v2243_v12, 111 }
  0x34   :  { %115 = vst [vmem:[#allocation2 + $0x1a0] sm:$0xff] %v1984_v0  ;;  %116 = vst [vmem:[#allocation2 + $0x1a8] sm:$0xff] %v1984_v0  ;;  %197 = vrot.lane.b32.xlu1 %v2122_v8, %s1985_s2  ;;  %195 = vrot.lane.b32.xlu0 %v2111_v6, %s1985_s2 }
  0x35   :  { %117 = vst [vmem:[#allocation2 + $0x1b0] sm:$0xff] %v1984_v0  ;;  %118 = vst [vmem:[#allocation2 + $0x1b8] sm:$0xff] %v1984_v0 }
  0x36   :  { %123 = vst [vmem:[#allocation2 + $0x1e0] sm:$0xff] %v1984_v0  ;;  %124 = vst [vmem:[#allocation2 + $0x1e8] sm:$0xff] %v1984_v0 }
  0x37   :  { %125 = vst [vmem:[#allocation2 + $0x1f0] sm:$0xff] %v1984_v0  ;;  %126 = vst [vmem:[#allocation2 + $0x1f8] sm:$0xff] %v1984_v0 }
  0x38   :  { %131 = vst [vmem:[#allocation2 + $0x220] sm:$0xff] %v1984_v0  ;;  %132 = vst [vmem:[#allocation2 + $0x228] sm:$0xff] %v1984_v0  ;;  %235 = vrot.lane.b32.xlu1 %v2101_v4, %s1980_s29  ;;  %233 = vrot.lane.b32.xlu0 %v2093_v2, %s1980_s29 }
  0x39   :  { %133 = vst [vmem:[#allocation2 + $0x230] sm:$0xff] %v1984_v0  ;;  %134 = vst [vmem:[#allocation2 + $0x238] sm:$0xff] %v1984_v0 }
  0x3a   :  { %135 = vst [vmem:[#allocation2 + $0x240] sm:$0xff] %v1984_v0  ;;  %136 = vst [vmem:[#allocation2 + $0x248] sm:$0xff] %v1984_v0 }
  0x3b   :  { %137 = vst [vmem:[#allocation2 + $0x250] sm:$0xff] %v1984_v0  ;;  %138 = vst [vmem:[#allocation2 + $0x258] sm:$0xff] %v1984_v0 }
  0x3c   :  { %491 = vst [vmem:[#allocation2 + $0x100] sm:$0xff] %v2093_v2  ;;  %493 = vst [vmem:[#allocation2 + $0x110] sm:$0xff] %v2091_v1  ;;  %239 = vrot.lane.b32.xlu1 %v2095_v3, %s1980_s29  ;;  %237 = vrot.lane.b32.xlu0 %v2091_v1, %s1980_s29 }
  0x3d   :  { %494 = vst [vmem:[#allocation2 + $0x118] sm:$0xff] %v2095_v3  ;;  %492 = vst [vmem:[#allocation2 + $0x108] sm:$0xff] %v2101_v4 }
  0x3e   :  { %495 = vst [vmem:[#allocation2 + $0x120] sm:$0xf] %v2106_v5  ;;  %497 = vst [vmem:[#allocation2 + $0x130] sm:$0xf] %v2111_v6 }
  0x3f   :  { %496 = vst [vmem:[#allocation2 + $0x128] sm:$0xf] %v2118_v7  ;;  %498 = vst [vmem:[#allocation2 + $0x138] sm:$0xf] %v2122_v8 }
  0x40   :  { %279 = vrot.lane.b32.xlu1 %v2118_v7, %s1980_s29  ;;  %277 = vrot.lane.b32.xlu0 %v2106_v5, %s1980_s29  ;;  %144 = vst.msk [vmem:[#allocation2 + $0x240] ss:$8 sm:$0xf] %vm141_vm1, %v1992_v37 }
  0x44   :  { %283 = vrot.lane.b32.xlu1 %v2122_v8, %s1980_s29  ;;  %281 = vrot.lane.b32.xlu0 %v2111_v6, %s1980_s29 }
  0x48   :  { %321 = vrot.lane.b32.xlu1 %v2101_v4, %s1986_s1  ;;  %319 = vrot.lane.b32.xlu0 %v2093_v2, %s1986_s1 }
  0x4c   :  { %325 = vrot.lane.b32.xlu1 %v2095_v3, %s1986_s1  ;;  %323 = vrot.lane.b32.xlu0 %v2091_v1, %s1986_s1 }
  0x50   :  { %365 = vrot.lane.b32.xlu1 %v2118_v7, %s1986_s1  ;;  %363 = vrot.lane.b32.xlu0 %v2106_v5, %s1986_s1 }
  0x54   :  { %369 = vrot.lane.b32.xlu1 %v2122_v8, %s1986_s1  ;;  %367 = vrot.lane.b32.xlu0 %v2111_v6, %s1986_s1 }
  0x58   :  { %407 = vrot.lane.b32.xlu1 %v2101_v4, %s1987_s24  ;;  %405 = vrot.lane.b32.xlu0 %v2093_v2, %s1987_s24 }
  0x5c   :  { %411 = vrot.lane.b32.xlu1 %v2095_v3, %s1987_s24  ;;  %409 = vrot.lane.b32.xlu0 %v2091_v1, %s1987_s24 }
  0x60   :  { %451 = vrot.lane.b32.xlu1 %v2118_v7, %s1987_s24  ;;  %449 = vrot.lane.b32.xlu0 %v2106_v5, %s1987_s24 }
  0x64   :  { %455 = vrot.lane.b32.xlu1 %v2122_v8, %s1987_s24  ;;  %453 = vrot.lane.b32.xlu0 %v2111_v6, %s1987_s24 }
  0x68   :  { %501 = vrot.lane.b32.xlu1 %v2101_v4, %s1988_s25  ;;  %499 = vrot.lane.b32.xlu0 %v2093_v2, %s1988_s25 }
  0x6c   :  { %505 = vrot.lane.b32.xlu1 %v2095_v3, %s1988_s25  ;;  %503 = vrot.lane.b32.xlu0 %v2091_v1, %s1988_s25 }
  0x70   :  { %545 = vrot.lane.b32.xlu1 %v2118_v7, %s1988_s25  ;;  %543 = vrot.lane.b32.xlu0 %v2106_v5, %s1988_s25 }
  0x74   :  { %549 = vrot.lane.b32.xlu1 %v2122_v8, %s1988_s25  ;;  %547 = vrot.lane.b32.xlu0 %v2111_v6, %s1988_s25 }
  0x78   :  { %587 = vrot.lane.b32.xlu1 %v2101_v4, %s1989_s26  ;;  %585 = vrot.lane.b32.xlu0 %v2093_v2, %s1989_s26 }
  0x7c   :  { %591 = vrot.lane.b32.xlu1 %v2095_v3, %s1989_s26  ;;  %589 = vrot.lane.b32.xlu0 %v2091_v1, %s1989_s26 }
  0x80   :  { %631 = vrot.lane.b32.xlu1 %v2118_v7, %s1989_s26  ;;  %629 = vrot.lane.b32.xlu0 %v2106_v5, %s1989_s26 }
  0x84   :  { %635 = vrot.lane.b32.xlu1 %v2122_v8, %s1989_s26  ;;  %633 = vrot.lane.b32.xlu0 %v2111_v6, %s1989_s26 }
  0x88   :  { %673 = vrot.lane.b32.xlu1 %v2101_v4, %s1990_s27  ;;  %671 = vrot.lane.b32.xlu0 %v2093_v2, %s1990_s27 }
  0x8c   :  { %677 = vrot.lane.b32.xlu1 %v2095_v3, %s1990_s27  ;;  %675 = vrot.lane.b32.xlu0 %v2091_v1, %s1990_s27 }
  0x90   :  { %717 = vrot.lane.b32.xlu1 %v2118_v7, %s1990_s27  ;;  %715 = vrot.lane.b32.xlu0 %v2106_v5, %s1990_s27 }
  0x94   :  { %721 = vrot.lane.b32.xlu1 %v2122_v8, %s1990_s27  ;;  %719 = vrot.lane.b32.xlu0 %v2111_v6, %s1990_s27 }
  0x98   :  { %759 = vrot.lane.b32.xlu1 %v2101_v4, %s1991_s30  ;;  %757 = vrot.lane.b32.xlu0 %v2093_v2, %s1991_s30 }
  0x9a   :  { %v151_v17 = vpop.permute.xlu1 %150  ;;  %v147_v18 = vpop.permute.xlu0 %146 }
  0x9c   :  { %763 = vrot.lane.b32.xlu1 %v2095_v3, %s1991_s30  ;;  %761 = vrot.lane.b32.xlu0 %v2091_v1, %s1991_s30 }
  0x9e   :  { %v153_v24 = vpop.permute.xlu1 %152  ;;  %v149_v25 = vpop.permute.xlu0 %148 }
  0x9f   :  { %v157_v27 = vsel %vm156_vm0, %v151_v17, %v153_v24  ;;  %v160_v28 = vsel %vm156_vm0, %v153_v24, %v147_v18  ;;  %v158_v29 = vsel %vm156_vm0, %v149_v25, %v151_v17  ;;  %v159_v30 = vsel %vm156_vm0, %v147_v18, %v149_v25 }
  0xa0   :  { %v2269_v31 = vmul.f32 %v166_v19, %v160_v28  ;;  %v2271_v32 = vmul.f32 %v178_v21, %v157_v27  ;;  %v184_v33 = vmul.f32 %v170_v22, %v159_v30  ;;  %v2273_v34 = vmul.f32 %v174_v23, %v158_v29  ;;  %803 = vrot.lane.b32.xlu1 %v2118_v7, %s1991_s30 }
  0xa1   :  { %801 = vrot.lane.b32.xlu0 %v2106_v5, %s1991_s30  ;;  %v298_v18 = vrot.slane %v289_v62, %v2247_v15  ;;  %v294_v28 = vrot.slane %v289_v62, %v2237_v11  ;;  %v302_v30 = vrot.slane %v289_v62, %v2249_v16 }
  0xa2   :  { %v194_v35 = vpop.permute.xlu1 %193  ;;  %v192_v36 = vpop.permute.xlu0 %191 }
  0xa3   :  { %v201_v38 = vsel %vm156_vm0, %v192_v36, %v194_v35 }
  0xa4   :  { %v226_v39 = vmul.f32 %v212_v26, %v201_v38  ;;  %807 = vrot.lane.b32.xlu1 %v2122_v8, %s1991_s30 }
  0xa5   :  { %805 = vrot.lane.b32.xlu0 %v2111_v6, %s1991_s30 }
  0xa6   :  { %230 = vst [vmem:[#allocation2 + $0x28] sm:$0xf] %v226_v39  ;;  %v198_v44 = vpop.permute.xlu1 %197  ;;  %v196_v45 = vpop.permute.xlu0 %195 }
  0xa7   :  { %v202_v46 = vsel %vm156_vm0, %v198_v44, %v192_v36  ;;  %v199_v47 = vsel %vm156_vm0, %v196_v45, %v198_v44  ;;  %v200_v48 = vsel %vm156_vm0, %v194_v35, %v196_v45  ;;  %v333_v35 = vld [vmem:[#allocation7 + $0x8] sm:$0xf] }
  0xa8   :  { %v225_v49 = vmul.f32 %v208_v40, %v202_v46  ;;  %v227_v50 = vmul.f32 %v216_v41, %v200_v48  ;;  %v228_v51 = vmul.f32 %v220_v42, %v199_v47  ;;  %v342_v41 = vrot.slane %v333_v35, %v2247_v15 }
  0xa9   :  { %v338_v46 = vrot.slane %v333_v35, %v2237_v11  ;;  %v346_v47 = vrot.slane %v333_v35, %v2249_v16  ;;  %v350_v48 = vrot.slane %v333_v35, %v2245_v14 }
  0xaa   :  { %229 = vst [vmem:[#allocation2 + $0x20] sm:$0xf] %v225_v49  ;;  %231 = vst [vmem:[#allocation2 + $0x30] sm:$0xf] %v227_v50  ;;  %v236_v54 = vpop.permute.xlu1 %235  ;;  %v234_v55 = vpop.permute.xlu0 %233  ;;  %v375_v50 = vld [vmem:[#allocation7 + $0x8] sm:$0xf] }
  0xab   :  { %232 = vst [vmem:[#allocation2 + $0x38] sm:$0xf] %v228_v51  ;;  %v244_v56 = vsel %vm241_vm2, %v234_v55, %v236_v54 }
  0xac   :  { %v2303_v57 = vmul.f32 %v256_v52, %v244_v56 }
  0xad   :  { %v854_v61 = vld [vmem:[#allocation2 + $0x28] sm:$0xff] }
  0xae   :  { %v240_v63 = vpop.permute.xlu1 %239  ;;  %v238_v5 = vpop.permute.xlu0 %237  ;;  %v1736_v6 = vpack.c.bf16 %v854_v61, %v184_v33  ;;  %v306_v33 = vrot.slane %v289_v62, %v2245_v14  ;;  %v384_v61 = vrot.slane %v375_v50, %v2247_v15 }
  0xaf   :  { %v245_v7 = vsel %vm241_vm2, %v240_v63, %v234_v55  ;;  %v242_v8 = vsel %vm241_vm2, %v238_v5, %v240_v63  ;;  %v243_v9 = vsel %vm241_vm2, %v236_v54, %v238_v5 }
  0xb0   :  { %v2314_v10 = vmul.f32 %v252_v58, %v245_v7  ;;  %v2316_v13 = vmul.f32 %v260_v59, %v243_v9  ;;  %v2318_v17 = vmul.f32 %v264_v60, %v242_v8  ;;  %1737 = vmatprep.subr.bf16.mxu0 %v1736_v6 }
  0xb1   :  { %v853_v19 = vld [vmem:[#allocation2 + $0x20] sm:$0xff]  ;;  %v855_v21 = vld [vmem:[#allocation2 + $0x30] sm:$0xff] }
  0xb2   :  { %v856_v20 = vld [vmem:[#allocation2 + $0x38] sm:$0xff]  ;;  %v280_v22 = vpop.permute.xlu1 %279  ;;  %v278_v23 = vpop.permute.xlu0 %277  ;;  %v1738_v24 = vpack.c.bf16 %v853_v19, %v2269_v31  ;;  %v1774_v26 = vpack.c.bf16 %v855_v21, %v2273_v34  ;;  %v380_v19 = vrot.slane %v375_v50, %v2237_v11  ;;  %v388_v21 = vrot.slane %v375_v50, %v2249_v16 }
  0xb3   :  { %v1772_v25 = vpack.c.bf16 %v856_v20, %v2271_v32  ;;  %v287_v27 = vsel %vm241_vm2, %v278_v23, %v280_v22 }
  0xb4   :  { %v312_v29 = vmul.f32 %v298_v18, %v287_v27  ;;  %1739 = vmatpush1.bf16.msra.mxu0 %v1738_v24 }
  0xb5   :  { %1773 = vmatprep.subr.bf16.mxu1 %v1772_v25 }
  0xb6   :  { %1775 = vmatpush1.bf16.msra.mxu1 %v1774_v26  ;;  %316 = vst [vmem:[#allocation2 + $0x68] sm:$0xf] %v312_v29  ;;  %v284_v31 = vpop.permute.xlu1 %283  ;;  %v282_v36 = vpop.permute.xlu0 %281 }
  0xb7   :  { %v288_v32 = vsel %vm241_vm2, %v284_v31, %v278_v23  ;;  %v285_v34 = vsel %vm241_vm2, %v282_v36, %v284_v31  ;;  %v286_v37 = vsel %vm241_vm2, %v280_v22, %v282_v36  ;;  %v392_v22 = vrot.slane %v375_v50, %v2245_v14  ;;  %v419_v23 = vld [vmem:[#allocation7 + $0xc] sm:$0xf] }
  0xb8   :  { %v311_v38 = vmul.f32 %v294_v28, %v288_v32  ;;  %v313_v39 = vmul.f32 %v302_v30, %v286_v37  ;;  %v314_v40 = vmul.f32 %v306_v33, %v285_v34  ;;  %v428_v29 = vrot.slane %v419_v23, %v2247_v15 }
  0xb9   :  { %v424_v36 = vrot.slane %v419_v23, %v2237_v11  ;;  %v432_v32 = vrot.slane %v419_v23, %v2249_v16  ;;  %v436_v34 = vrot.slane %v419_v23, %v2245_v14 }
  0xba   :  { %315 = vst [vmem:[#allocation2 + $0x60] sm:$0xf] %v311_v38  ;;  %317 = vst [vmem:[#allocation2 + $0x70] sm:$0xf] %v313_v39  ;;  %v322_v42 = vpop.permute.xlu1 %321  ;;  %v320_v43 = vpop.permute.xlu0 %319  ;;  %v461_v38 = vld [vmem:[#allocation7 + $0xc] sm:$0xf] }
  0xbb   :  { %318 = vst [vmem:[#allocation2 + $0x78] sm:$0xf] %v314_v40  ;;  %v330_v44 = vsel %vm327_vm4, %v320_v43, %v322_v42 }
  0xbc   :  { %v2339_v45 = vmul.f32 %v342_v41, %v330_v44 }
  0xbd   :  { %v862_v49 = vld [vmem:[#allocation2 + $0x68] sm:$0xff] }
  0xbe   :  { %v326_v51 = vpop.permute.xlu1 %325  ;;  %v324_v52 = vpop.permute.xlu0 %323  ;;  %v1740_v53 = vpack.c.bf16 %v862_v49, %v2303_v57  ;;  %v470_v49 = vrot.slane %v461_v38, %v2247_v15 }
  0xbf   :  { %v331_v54 = vsel %vm327_vm4, %v326_v51, %v320_v43  ;;  %v328_v55 = vsel %vm327_vm4, %v324_v52, %v326_v51  ;;  %v329_v56 = vsel %vm327_vm4, %v322_v42, %v324_v52 }
  0xc0   :  { %v2351_v58 = vmul.f32 %v338_v46, %v331_v54  ;;  %v2353_v59 = vmul.f32 %v346_v47, %v329_v56  ;;  %v2355_v60 = vmul.f32 %v350_v48, %v328_v55  ;;  %1741 = vmatprep.subr.bf16.mxu0 %v1740_v53 }
  0xc1   :  { %v861_v62 = vld [vmem:[#allocation2 + $0x60] sm:$0xff]  ;;  %v863_v63 = vld [vmem:[#allocation2 + $0x70] sm:$0xff] }
  0xc2   :  { %v864_v57 = vld [vmem:[#allocation2 + $0x78] sm:$0xff]  ;;  %v366_v5 = vpop.permute.xlu1 %365  ;;  %v364_v6 = vpop.permute.xlu0 %363  ;;  %v1742_v7 = vpack.c.bf16 %v861_v62, %v2314_v10  ;;  %v1778_v9 = vpack.c.bf16 %v863_v63, %v2316_v13  ;;  %v466_v62 = vrot.slane %v461_v38, %v2237_v11  ;;  %v474_v63 = vrot.slane %v461_v38, %v2249_v16 }
  0xc3   :  { %v1776_v8 = vpack.c.bf16 %v864_v57, %v2318_v17  ;;  %v373_v18 = vsel %vm327_vm4, %v364_v6, %v366_v5 }
  0xc4   :  { %v398_v20 = vmul.f32 %v384_v61, %v373_v18  ;;  %1743 = vmatpush1.bf16.msra.mxu0 %v1742_v7 }
  0xc5   :  { %1777 = vmatprep.subr.bf16.mxu1 %v1776_v8 }
  0xc6   :  { %1779 = vmatpush1.bf16.msra.mxu1 %v1778_v9  ;;  %402 = vst [vmem:[#allocation2 + $0xa8] sm:$0xf] %v398_v20  ;;  %v370_v10 = vpop.permute.xlu1 %369  ;;  %v368_v24 = vpop.permute.xlu0 %367 }
  0xc7   :  { %v374_v13 = vsel %vm327_vm4, %v370_v10, %v364_v6  ;;  %v371_v17 = vsel %vm327_vm4, %v368_v24, %v370_v10  ;;  %v372_v25 = vsel %vm327_vm4, %v366_v5, %v368_v24  ;;  %v478_v5 = vrot.slane %v461_v38, %v2245_v14  ;;  %v513_v6 = vld [vmem:[#allocation7 + $0x14] sm:$0xf] }
  0xc8   :  { %v397_v26 = vmul.f32 %v380_v19, %v374_v13  ;;  %v399_v27 = vmul.f32 %v388_v21, %v372_v25  ;;  %v400_v28 = vmul.f32 %v392_v22, %v371_v17  ;;  %v518_v20 = vrot.slane %v513_v6, %v2237_v11 }
  0xc9   :  { %v530_v24 = vrot.slane %v513_v6, %v2245_v14  ;;  %v522_v13 = vrot.slane %v513_v6, %v2247_v15  ;;  %v526_v17 = vrot.slane %v513_v6, %v2249_v16 }
  0xca   :  { %401 = vst [vmem:[#allocation2 + $0xa0] sm:$0xf] %v397_v26  ;;  %403 = vst [vmem:[#allocation2 + $0xb0] sm:$0xf] %v399_v27  ;;  %v408_v30 = vpop.permute.xlu1 %407  ;;  %v406_v33 = vpop.permute.xlu0 %405  ;;  %v555_v26 = vld [vmem:[#allocation7 + $0x14] sm:$0xf] }
  0xcb   :  { %404 = vst [vmem:[#allocation2 + $0xb8] sm:$0xf] %v400_v28  ;;  %v416_v35 = vsel %vm413_vm5, %v406_v33, %v408_v30 }
  0xcc   :  { %v2376_v31 = vmul.f32 %v428_v29, %v416_v35 }
  0xcd   :  { %v870_v37 = vld [vmem:[#allocation2 + $0xa8] sm:$0xff] }
  0xce   :  { %v412_v39 = vpop.permute.xlu1 %411  ;;  %v410_v40 = vpop.permute.xlu0 %409  ;;  %v1744_v41 = vpack.c.bf16 %v870_v37, %v2339_v45 }
  0xcf   :  { %v417_v42 = vsel %vm413_vm5, %v412_v39, %v406_v33  ;;  %v414_v43 = vsel %vm413_vm5, %v410_v40, %v412_v39  ;;  %v415_v44 = vsel %vm413_vm5, %v408_v30, %v410_v40  ;;  %v886_v30 = vld [vmem:[#allocation2 + $0x128] sm:$0xff]  ;;  %v885_v39 = vld [vmem:[#allocation2 + $0x120] sm:$0xff] }
  0xd0   :  { %v2388_v46 = vmul.f32 %v424_v36, %v417_v42  ;;  %v2390_v47 = vmul.f32 %v432_v32, %v415_v44  ;;  %v2392_v48 = vmul.f32 %v436_v34, %v414_v43  ;;  %1745 = vmatprep.subr.bf16.mxu0 %v1744_v41  ;;  %v888_v32 = vld [vmem:[#allocation2 + $0x138] sm:$0xff]  ;;  %v1752_v43 = vpack.c.bf16 %v886_v30, %v2101_v4 }
  0xd1   :  { %v869_v50 = vld [vmem:[#allocation2 + $0xa0] sm:$0xff]  ;;  %v871_v51 = vld [vmem:[#allocation2 + $0xb0] sm:$0xff]  ;;  %v568_v4 = vrot.slane %v555_v26, %v2249_v16 }
  0xd2   :  { %v872_v45 = vld [vmem:[#allocation2 + $0xb8] sm:$0xff]  ;;  %v452_v52 = vpop.permute.xlu1 %451  ;;  %v450_v53 = vpop.permute.xlu0 %449  ;;  %v1746_v54 = vpack.c.bf16 %v869_v50, %v2351_v58  ;;  %v1782_v56 = vpack.c.bf16 %v871_v51, %v2353_v59 }
  0xd3   :  { %v1780_v55 = vpack.c.bf16 %v872_v45, %v2355_v60  ;;  %v459_v61 = vsel %vm413_vm5, %v450_v53, %v452_v52 }
  0xd4   :  { %v484_v57 = vmul.f32 %v470_v49, %v459_v61  ;;  %1747 = vmatpush1.bf16.msra.mxu0 %v1746_v54 }
  0xd5   :  { %1781 = vmatprep.subr.bf16.mxu1 %v1780_v55  ;;  %v572_v55 = vrot.slane %v555_v26, %v2245_v14 }
  0xd6   :  { %1783 = vmatpush1.bf16.msra.mxu1 %v1782_v56  ;;  %488 = vst [vmem:[#allocation2 + $0xe8] sm:$0xf] %v484_v57  ;;  %v456_v58 = vpop.permute.xlu1 %455  ;;  %v454_v7 = vpop.permute.xlu0 %453  ;;  %v564_v56 = vrot.slane %v555_v26, %v2247_v15 }
  0xd7   :  { %v460_v59 = vsel %vm413_vm5, %v456_v58, %v450_v53  ;;  %v457_v60 = vsel %vm413_vm5, %v454_v7, %v456_v58  ;;  %v458_v8 = vsel %vm413_vm5, %v452_v52, %v454_v7  ;;  %v1788_v52 = vpack.c.bf16 %v888_v32, %v2095_v3  ;;  %v887_v53 = vld [vmem:[#allocation2 + $0x130] sm:$0xff] }
  0xd8   :  { %v483_v9 = vmul.f32 %v466_v62, %v460_v59  ;;  %v485_v18 = vmul.f32 %v474_v63, %v458_v8  ;;  %v486_v19 = vmul.f32 %v478_v5, %v457_v60  ;;  %v1790_v3 = vpack.c.bf16 %v887_v53, %v2091_v1 }
  0xda   :  { %487 = vst [vmem:[#allocation2 + $0xe0] sm:$0xf] %v483_v9  ;;  %489 = vst [vmem:[#allocation2 + $0xf0] sm:$0xf] %v485_v18  ;;  %v502_v21 = vpop.permute.xlu1 %501  ;;  %v500_v22 = vpop.permute.xlu0 %499 }
  0xdb   :  { %490 = vst [vmem:[#allocation2 + $0xf8] sm:$0xf] %v486_v19  ;;  %v510_v23 = vsel %vm507_vm6, %v500_v22, %v502_v21 }
  0xdc   :  { %v2413_v10 = vmul.f32 %v518_v20, %v510_v23  ;;  %v641_v20 = vld [vmem:[#allocation7 + $0x18] sm:$0xf] }
  0xdd   :  { %v878_v25 = vld [vmem:[#allocation2 + $0xe8] sm:$0xff] }
  0xde   :  { %v506_v27 = vpop.permute.xlu1 %505  ;;  %v504_v28 = vpop.permute.xlu0 %503  ;;  %v1748_v29 = vpack.c.bf16 %v878_v25, %v2376_v31  ;;  %v560_v31 = vrot.slane %v555_v26, %v2237_v11 }
  0xdf   :  { %v511_v33 = vsel %vm507_vm6, %v506_v27, %v500_v22  ;;  %v508_v35 = vsel %vm507_vm6, %v504_v28, %v506_v27  ;;  %v509_v36 = vsel %vm507_vm6, %v502_v21, %v504_v28  ;;  %v646_v27 = vrot.slane %v641_v20, %v2237_v11 }
  0xe0   :  { %v2425_v34 = vmul.f32 %v530_v24, %v511_v33  ;;  %v2427_v37 = vmul.f32 %v522_v13, %v509_v36  ;;  %v2429_v38 = vmul.f32 %v526_v17, %v508_v35  ;;  %1749 = vmatprep.subr.bf16.mxu0 %v1748_v29 }
  0xe1   :  { %v877_v40 = vld [vmem:[#allocation2 + $0xe0] sm:$0xff]  ;;  %v879_v42 = vld [vmem:[#allocation2 + $0xf0] sm:$0xff] }
  0xe2   :  { %v880_v41 = vld [vmem:[#allocation2 + $0xf8] sm:$0xff]  ;;  %v546_v44 = vpop.permute.xlu1 %545  ;;  %v544_v49 = vpop.permute.xlu0 %543  ;;  %v1750_v50 = vpack.c.bf16 %v877_v40, %v2388_v46  ;;  %v1786_v51 = vpack.c.bf16 %v879_v42, %v2390_v47  ;;  %v1754_v46 = vpack.c.bf16 %v885_v39, %v2093_v2  ;;  %v658_v42 = vrot.slane %v641_v20, %v2245_v14 }
  0xe3   :  { %v1784_v45 = vpack.c.bf16 %v880_v41, %v2392_v48  ;;  %v553_v54 = vsel %vm507_vm6, %v544_v49, %v546_v44  ;;  %v599_v48 = vld [vmem:[#allocation7 + $0x18] sm:$0xf] }
  0xe4   :  { %v577_v61 = vmul.f32 %v560_v31, %v553_v54  ;;  %1751 = vmatpush1.bf16.msra.mxu0 %v1750_v50  ;;  %v604_v1 = vrot.slane %v599_v48, %v2237_v11  ;;  %v616_v9 = vrot.slane %v599_v48, %v2245_v14  ;;  %v608_v18 = vrot.slane %v599_v48, %v2247_v15 }
  0xe5   :  { %1785 = vmatprep.subr.bf16.mxu1 %v1784_v45  ;;  %1753 = vmatprep.subr.bf16.mxu0 %v1752_v43  ;;  %v612_v19 = vrot.slane %v599_v48, %v2249_v16 }
  0xe6   :  { %1787 = vmatpush1.bf16.msra.mxu1 %v1786_v51  ;;  %581 = vst [vmem:[#allocation2 + $0x160] sm:$0xf] %v577_v61  ;;  %v550_v47 = vpop.permute.xlu1 %549  ;;  %v548_v62 = vpop.permute.xlu0 %547 }
  0xe7   :  { %1789 = vmatprep.subr.bf16.mxu1 %v1788_v52  ;;  %v554_v57 = vsel %vm507_vm6, %v550_v47, %v544_v49  ;;  %v551_v63 = vsel %vm507_vm6, %v548_v62, %v550_v47  ;;  %v552_v5 = vsel %vm507_vm6, %v546_v44, %v548_v62  ;;  %v650_v44 = vrot.slane %v641_v20, %v2247_v15  ;;  %v727_v47 = vld [vmem:[#allocation7 + $0x1c] sm:$0xf] }
  0xe8   :  { %v580_v2 = vmul.f32 %v572_v55, %v554_v57  ;;  %v578_v6 = vmul.f32 %v564_v56, %v552_v5  ;;  %v579_v58 = vmul.f32 %v568_v4, %v551_v63  ;;  %1755 = vmatpush1.bf16.msra.mxu0 %v1754_v46  ;;  %v654_v49 = vrot.slane %v641_v20, %v2249_v16 }
  0xea   :  { %1791 = vmatpush1.bf16.msra.mxu1 %v1790_v3  ;;  %584 = vst [vmem:[#allocation2 + $0x178] sm:$0xf] %v580_v2  ;;  %582 = vst [vmem:[#allocation2 + $0x168] sm:$0xf] %v578_v6  ;;  %v588_v7 = vpop.permute.xlu1 %587  ;;  %v586_v59 = vpop.permute.xlu0 %585 }
  0xeb   :  { %583 = vst [vmem:[#allocation2 + $0x170] sm:$0xf] %v579_v58  ;;  %v596_v60 = vsel %vm593_vm7, %v586_v59, %v588_v7 }
  0xec   :  { %v2454_v8 = vmul.f32 %v604_v1, %v596_v60 }
  0xed   :  { %v893_v28 = vld [vmem:[#allocation2 + $0x160] sm:$0xff] }
  0xee   :  { %v592_v21 = vpop.permute.xlu1 %591  ;;  %v590_v22 = vpop.permute.xlu0 %589  ;;  %v1758_v41 = vpack.c.bf16 %v893_v28, %v2413_v10 }
  0xef   :  { %v597_v23 = vsel %vm593_vm7, %v592_v21, %v586_v59  ;;  %v594_v24 = vsel %vm593_vm7, %v590_v22, %v592_v21  ;;  %v595_v13 = vsel %vm593_vm7, %v588_v7, %v590_v22  ;;  %v732_v7 = vrot.slane %v727_v47, %v2237_v11 }
  0xf0   :  { %v2465_v17 = vmul.f32 %v616_v9, %v597_v23  ;;  %v2467_v25 = vmul.f32 %v608_v18, %v595_v13  ;;  %v2469_v26 = vmul.f32 %v612_v19, %v594_v24 }
  0xf1   :  { %v894_v29 = vld [vmem:[#allocation2 + $0x168] sm:$0xff]  ;;  %v896_v30 = vld [vmem:[#allocation2 + $0x178] sm:$0xff] }
  0xf2   :  { %v895_v33 = vld [vmem:[#allocation2 + $0x170] sm:$0xff]  ;;  %v632_v35 = vpop.permute.xlu1 %631  ;;  %v630_v36 = vpop.permute.xlu0 %629  ;;  %v1756_v32 = vpack.c.bf16 %v894_v29, %v2427_v37  ;;  %v1792_v31 = vpack.c.bf16 %v896_v30, %v2425_v34  ;;  %v685_v37 = vld [vmem:[#allocation7 + $0x1c] sm:$0xf]  ;;  %v736_v29 = vrot.slane %v727_v47, %v2247_v15  ;;  %v740_v30 = vrot.slane %v727_v47, %v2249_v16 }
  0xf3   :  { %v1794_v39 = vpack.c.bf16 %v895_v33, %v2429_v38  ;;  %v639_v40 = vsel %vm593_vm7, %v630_v36, %v632_v35  ;;  %v690_v54 = vrot.slane %v685_v37, %v2237_v11  ;;  %v702_v46 = vrot.slane %v685_v37, %v2245_v14 }
  0xf4   :  { %v663_v43 = vmul.f32 %v646_v27, %v639_v40  ;;  %1757 = vmatprep.subr.bf16.mxu0 %v1756_v32  ;;  %1793 = vmatprep.subr.bf16.mxu1 %v1792_v31  ;;  %v694_v48 = vrot.slane %v685_v37, %v2247_v15  ;;  %v698_v3 = vrot.slane %v685_v37, %v2249_v16 }
  0xf5   :  { %1759 = vmatpush1.bf16.msra.mxu0 %v1758_v41  ;;  %1795 = vmatpush1.bf16.msra.mxu1 %v1794_v39  ;;  %v744_v27 = vrot.slane %v727_v47, %v2245_v14 }
  0xf6   :  { %667 = vst [vmem:[#allocation2 + $0x1a0] sm:$0xf] %v663_v43  ;;  %v636_v34 = vpop.permute.xlu1 %635  ;;  %v634_v38 = vpop.permute.xlu0 %633 }
  0xf7   :  { %v640_v50 = vsel %vm593_vm7, %v636_v34, %v630_v36  ;;  %v637_v10 = vsel %vm593_vm7, %v634_v38, %v636_v34  ;;  %v638_v45 = vsel %vm593_vm7, %v632_v35, %v634_v38 }
  0xf8   :  { %v666_v51 = vmul.f32 %v658_v42, %v640_v50  ;;  %v664_v52 = vmul.f32 %v650_v44, %v638_v45  ;;  %v665_v53 = vmul.f32 %v654_v49, %v637_v10  ;;  %v813_v50 = vld [vmem:[#allocation7 + $0x20] sm:$0xf] }
  0xfa   :  { %670 = vst [vmem:[#allocation2 + $0x1b8] sm:$0xf] %v666_v51  ;;  %668 = vst [vmem:[#allocation2 + $0x1a8] sm:$0xf] %v664_v52  ;;  %v674_v55 = vpop.permute.xlu1 %673  ;;  %v672_v56 = vpop.permute.xlu0 %671 }
  0xfb   :  { %669 = vst [vmem:[#allocation2 + $0x1b0] sm:$0xf] %v665_v53  ;;  %v682_v61 = vsel %vm679_vm8, %v672_v56, %v674_v55 }
  0xfc   :  { %v2491_v4 = vmul.f32 %v690_v54, %v682_v61 }
  0xfd   :  { %v901_v59 = vld [vmem:[#allocation2 + $0x1a0] sm:$0xff] }
  0xfe   :  { %v678_v62 = vpop.permute.xlu1 %677  ;;  %v676_v57 = vpop.permute.xlu0 %675  ;;  %v1762_v13 = vpack.c.bf16 %v901_v59, %v2454_v8 }
  0xff   :  { %v683_v63 = vsel %vm679_vm8, %v678_v62, %v672_v56  ;;  %v680_v5 = vsel %vm679_vm8, %v676_v57, %v678_v62  ;;  %v681_v2 = vsel %vm679_vm8, %v674_v55, %v676_v57  ;;  %v818_v56 = vrot.slane %v813_v50, %v2237_v11 }
 0x100   :  { %v2502_v6 = vmul.f32 %v702_v46, %v683_v63  ;;  %v2504_v58 = vmul.f32 %v694_v48, %v681_v2  ;;  %v2506_v1 = vmul.f32 %v698_v3, %v680_v5 }
 0x101   :  { %v902_v60 = vld [vmem:[#allocation2 + $0x1a8] sm:$0xff]  ;;  %v904_v9 = vld [vmem:[#allocation2 + $0x1b8] sm:$0xff] }
 0x102   :  { %v903_v18 = vld [vmem:[#allocation2 + $0x1b0] sm:$0xff]  ;;  %v718_v19 = vpop.permute.xlu1 %717  ;;  %v716_v20 = vpop.permute.xlu0 %715  ;;  %v1760_v21 = vpack.c.bf16 %v902_v60, %v2467_v25  ;;  %v1796_v22 = vpack.c.bf16 %v904_v9, %v2465_v17  ;;  %v771_v25 = vld [vmem:[#allocation7 + $0x20] sm:$0xf]  ;;  %v822_v60 = vrot.slane %v813_v50, %v2247_v15 }
 0x103   :  { %v1798_v23 = vpack.c.bf16 %v903_v18, %v2469_v26  ;;  %v725_v24 = vsel %vm679_vm8, %v716_v20, %v718_v19  ;;  %v776_v39 = vrot.slane %v771_v25, %v2237_v11  ;;  %v788_v44 = vrot.slane %v771_v25, %v2245_v14 }
 0x104   :  { %v749_v28 = vmul.f32 %v732_v7, %v725_v24  ;;  %1761 = vmatprep.subr.bf16.mxu0 %v1760_v21  ;;  %1797 = vmatprep.subr.bf16.mxu1 %v1796_v22  ;;  %v780_v49 = vrot.slane %v771_v25, %v2247_v15  ;;  %v784_v37 = vrot.slane %v771_v25, %v2249_v16 }
 0x105   :  { %1763 = vmatpush1.bf16.msra.mxu0 %v1762_v13  ;;  %1799 = vmatpush1.bf16.msra.mxu1 %v1798_v23  ;;  %v830_v7 = vrot.slane %v813_v50, %v2245_v14 }
 0x106   :  { %753 = vst [vmem:[#allocation2 + $0x1e0] sm:$0xf] %v749_v28  ;;  %v722_v17 = vpop.permute.xlu1 %721  ;;  %v720_v26 = vpop.permute.xlu0 %719 }
 0x107   :  { %v726_v33 = vsel %vm679_vm8, %v722_v17, %v716_v20  ;;  %v723_v8 = vsel %vm679_vm8, %v720_v26, %v722_v17  ;;  %v724_v35 = vsel %vm679_vm8, %v718_v19, %v720_v26  ;;  %v922_v17 = vld [vmem:[#allocation2 + $0x248] sm:$0xff]  ;;  %v923_v26 = vld [vmem:[#allocation2 + $0x250] sm:$0xff] }
 0x108   :  { %v752_v36 = vmul.f32 %v744_v27, %v726_v33  ;;  %v750_v32 = vmul.f32 %v736_v29, %v724_v35  ;;  %v751_v31 = vmul.f32 %v740_v30, %v723_v8  ;;  %v924_v30 = vld [vmem:[#allocation2 + $0x258] sm:$0xff]  ;;  %v921_v33 = vld [vmem:[#allocation2 + $0x240] sm:$0xff]  ;;  %v843_v8 = vld [vmem:[%s2787_s3] sm:$0xff] }
 0x10a   :  { %756 = vst [vmem:[#allocation2 + $0x1f8] sm:$0xf] %v752_v36  ;;  %754 = vst [vmem:[#allocation2 + $0x1e8] sm:$0xf] %v750_v32  ;;  %v760_v40 = vpop.permute.xlu1 %759  ;;  %v758_v41 = vpop.permute.xlu0 %757 }
 0x10b   :  { %755 = vst [vmem:[#allocation2 + $0x1f0] sm:$0xf] %v751_v31  ;;  %v768_v42 = vsel %vm765_vm9, %v758_v41, %v760_v40 }
 0x10c   :  { %v793_v43 = vmul.f32 %v776_v39, %v768_v42 }
 0x10d   :  { %v909_v55 = vld [vmem:[#allocation2 + $0x1e0] sm:$0xff] }
 0x10e   :  { %v764_v34 = vpop.permute.xlu1 %763  ;;  %v762_v38 = vpop.permute.xlu0 %761  ;;  %v1766_v5 = vpack.c.bf16 %v909_v55, %v2491_v4 }
 0x10f   :  { %v769_v10 = vsel %vm765_vm9, %v764_v34, %v758_v41  ;;  %v766_v45 = vsel %vm765_vm9, %v762_v38, %v764_v34  ;;  %v767_v51 = vsel %vm765_vm9, %v760_v40, %v762_v38 }
 0x110   :  { %v796_v52 = vmul.f32 %v788_v44, %v769_v10  ;;  %v794_v53 = vmul.f32 %v780_v49, %v767_v51  ;;  %v795_v54 = vmul.f32 %v784_v37, %v766_v45 }
 0x111   :  { %v910_v61 = vld [vmem:[#allocation2 + $0x1e8] sm:$0xff]  ;;  %v912_v46 = vld [vmem:[#allocation2 + $0x1f8] sm:$0xff] }
 0x112   :  { %v911_v48 = vld [vmem:[#allocation2 + $0x1f0] sm:$0xff]  ;;  %v804_v3 = vpop.permute.xlu1 %803  ;;  %v1764_v47 = vpack.c.bf16 %v910_v61, %v2504_v58  ;;  %v1800_v62 = vpack.c.bf16 %v912_v46, %v2502_v6  ;;  %v826_v58 = vrot.slane %v813_v50, %v2249_v16 }
 0x113   :  { %v1802_v57 = vpack.c.bf16 %v911_v48, %v2506_v1  ;;  %v802_v63 = vpop.permute.xlu0 %801  ;;  %v2566_v46 = vld [vmem:[#allocation2 + $0x110] sm:$0xff] }
 0x114   :  { %v811_v2 = vsel %vm765_vm9, %v802_v63, %v804_v3  ;;  %1765 = vmatprep.subr.bf16.mxu0 %v1764_v47  ;;  %1801 = vmatprep.subr.bf16.mxu1 %v1800_v62  ;;  %v846_v62 = vld [vmem:[%s2787_s3 + $0x18] sm:$0xff] }
 0x115   :  { %v835_v59 = vmul.f32 %v818_v56, %v811_v2  ;;  %1767 = vmatpush1.bf16.msra.mxu0 %v1766_v5  ;;  %1803 = vmatpush1.bf16.msra.mxu1 %v1802_v57  ;;  %v2561_v56 = vld [vmem:[#allocation2 + $0x108] sm:$0xff]  ;;  %v845_v57 = vld [vmem:[%s2787_s3 + $0x10] sm:$0xff]  ;;  %v847_v5 = vld [vmem:[%s2787_s3 + $0x20] sm:$0xff] }
 0x116   :  { %v808_v6 = vpop.permute.xlu1 %807 }
 0x117   :  { %839 = vst [vmem:[#allocation2 + $0x220] sm:$0xf] %v835_v59  ;;  %v812_v1 = vsel %vm765_vm9, %v808_v6, %v802_v63  ;;  %v806_v4 = vpop.permute.xlu0 %805  ;;  %v848_v63 = vld [vmem:[%s2787_s3 + $0x28] sm:$0xff] }
 0x118   :  { %v838_v9 = vmul.f32 %v830_v7, %v812_v1  ;;  %v809_v18 = vsel %vm765_vm9, %v806_v4, %v808_v6  ;;  %v810_v19 = vsel %vm765_vm9, %v804_v3, %v806_v4  ;;  %v2573_v3 = vld [vmem:[#allocation2 + $0x118] sm:$0xff]  ;;  %v1165_v7 = vld [vmem:[#allocation7] sm:$0xf] }
 0x119   :  { %v836_v20 = vmul.f32 %v822_v60, %v810_v19  ;;  %v837_v21 = vmul.f32 %v826_v58, %v809_v18  ;;  %v1207_v60 = vld [vmem:[#allocation7 + $0x4] sm:$0xf]  ;;  %v1174_v6 = vrot.slane %v1165_v7, %v2247_v15  ;;  %v1170_v19 = vrot.slane %v1165_v7, %v2237_v11 }
 0x11a   :  { %842 = vst [vmem:[#allocation2 + $0x238] sm:$0xf] %v838_v9  ;;  %v1216_v1 = vrot.slane %v1207_v60, %v2247_v15 }
 0x11b   :  { %840 = vst [vmem:[#allocation2 + $0x228] sm:$0xf] %v836_v20  ;;  %841 = vst [vmem:[#allocation2 + $0x230] sm:$0xf] %v837_v21  ;;  %v1182_v20 = vrot.slane %v1165_v7, %v2245_v14 }
 0x11e   :  { %v917_v23 = vld [vmem:[#allocation2 + $0x220] sm:$0xff] }
 0x11f   :  { %v1770_v25 = vpack.c.bf16 %v917_v23, %v793_v43 }
 0x121   :  { %v920_v22 = vld [vmem:[#allocation2 + $0x238] sm:$0xff] }
 0x122   :  { %v918_v24 = vld [vmem:[#allocation2 + $0x228] sm:$0xff]  ;;  %v1804_v13 = vpack.c.bf16 %v920_v22, %v796_v52  ;;  %v919_v27 = vld [vmem:[#allocation2 + $0x230] sm:$0xff]  ;;  %v1220_v22 = vrot.slane %v1207_v60, %v2249_v16 }
 0x123   :  { %v1768_v28 = vpack.c.bf16 %v918_v24, %v794_v53  ;;  %v1806_v29 = vpack.c.bf16 %v919_v27, %v795_v54  ;;  %v2556_v53 = vld [vmem:[#allocation2 + $0x100] sm:$0xff]  ;;  %v1224_v27 = vrot.slane %v1207_v60, %v2245_v14 }
 0x124   :  { %1805 = vmatprep.subr.bf16.mxu1 %v1804_v13  ;;  %v1212_v13 = vrot.slane %v1207_v60, %v2237_v11 }
 0x125   :  { %1769 = vmatprep.subr.bf16.mxu0 %v1768_v28  ;;  %1807 = vmatpush1.bf16.msra.mxu1 %v1806_v29  ;;  %v1178_v28 = vrot.slane %v1165_v7, %v2249_v16 }
 0x126   :  { %1771 = vmatpush1.bf16.msra.mxu0 %v1770_v25  ;;  %1054 = vmatprep.subr.mxu1 %v924_v30 }
 0x127   :  { %971 = vmatprep.subr.mxu0 %v922_v17 }
 0x129   :  { %1055 = vmatpush1.msra.mxu1 %v923_v26 }
 0x12a   :  { %972 = vmatpush1.msra.mxu0 %v921_v33  ;;  %1083 = vmatmul.mubr.f32.vlgmr.msra.gmra.mrb[0].mxu1 %v843_v8 }
 0x12b   :  { %1000 = vmatmul.mubr.f32.vlgmr.msra.gmra.mrb[0].mxu0 %v843_v8  ;;  %1724 = vmatprep.mubr.msk.f32.mxu1 %vm925_vm3, %v846_v62 }
 0x12c   :  { %1721 = vmatprep.mubr.msk.f32.mxu0 %vm925_vm3, %v846_v62 }
 0x12e   :  { %1089 = vmatmul.mubr.f32.gmra.mrb[2].mxu1 %v845_v57 }
 0x12f   :  { %1006 = vmatmul.mubr.f32.gmra.mrb[2].mxu0 %v845_v57  ;;  %1725 = vmatprep.mubr.msk.f32.mxu1 %vm925_vm3, %v848_v63 }
 0x130   :  { %1722 = vmatprep.mubr.msk.f32.mxu0 %vm925_vm3, %v848_v63 }
 0x132   :  { %1095 = vmatmul.mubr.f32.gmra.mrb[4].mxu1 %v847_v5 }
 0x133   :  { %1012 = vmatmul.mubr.f32.gmra.mrb[4].mxu0 %v847_v5  ;;  %1669 = vmatprep.mubr.f32.mxu1 %v1984_v0 }
 0x134   :  { %1598 = vmatprep.mubr.f32.mxu0 %v1984_v0 }
 0x1fd   :  { %v1084_v35 = vpop.f32.mrb[0].mxu1 }
 0x1fe   :  { %v1001_v36 = vpop.f32.mrb[0].mxu0  ;;  %v1728_v32 = vmul.f32 -1.442695, %v1084_v35  ;;  %v1086_v31 = vpop.f32.mrb[1].mxu1 }
 0x1ff   :  { %v1726_v39 = vmul.f32 -1.442695, %v1001_v36  ;;  %v1003_v40 = vpop.f32.mrb[1].mxu0  ;;  %v1729_v41 = vmul.f32 -1.442695, %v1086_v31 }
 0x200   :  { %v1727_v42 = vmul.f32 -1.442695, %v1003_v40  ;;  %1862 = vpow2.f32 %v1728_v32 }
 0x201   :  { %1864 = vpow2.f32 %v1726_v39 }
 0x202   :  { %1866 = vpow2.f32 %v1727_v42 }
 0x203   :  { %1868 = vpow2.f32 %v1729_v41 }
 0x20a   :  { %v1863_v43 = vpop.eup %1862 }
 0x20b   :  { %v1865_v44 = vpop.eup %1864  ;;  %v1115_v49 = vadd.f32 1.0, %v1863_v43 }
 0x20c   :  { %v1867_v37 = vpop.eup %1866  ;;  %v1113_v34 = vadd.f32 1.0, %v1865_v44 }
 0x20d   :  { %v1869_v38 = vpop.eup %1868  ;;  %v1114_v50 = vadd.f32 1.0, %v1867_v37  ;;  %1870 = vrcp.f32 %v1115_v49 }
 0x20e   :  { %1872 = vrcp.f32 %v1113_v34  ;;  %v1116_v10 = vadd.f32 1.0, %v1869_v38  ;;  %v1249_v38 = vld [vmem:[#allocation7 + $0x8] sm:$0xf] }
 0x20f   :  { %1874 = vrcp.f32 %v1114_v50  ;;  %v1254_v63 = vrot.slane %v1249_v38, %v2237_v11  ;;  %v1266_v5 = vrot.slane %v1249_v38, %v2245_v14 }
 0x210   :  { %1876 = vrcp.f32 %v1116_v10  ;;  %v1291_v10 = vld [vmem:[#allocation7 + $0xc] sm:$0xf] }
 0x211   :  { %v1296_v60 = vrot.slane %v1291_v10, %v2237_v11 }
 0x217   :  { %v1871_v45 = vpop.eup %1870 }
 0x218   :  { %v1873_v51 = vpop.eup %1872  ;;  %v2569_v48 = vmul.f32 %v2566_v46, %v1871_v45 }
 0x219   :  { %v1875_v52 = vpop.eup %1874  ;;  %v2559_v54 = vmul.f32 %v2556_v53, %v1873_v51  ;;  %v1258_v51 = vrot.slane %v1249_v38, %v2247_v15 }
 0x21a   :  { %v1877_v55 = vpop.eup %1876  ;;  %v2564_v61 = vmul.f32 %v2561_v56, %v1875_v52  ;;  %v1300_v52 = vrot.slane %v1291_v10, %v2247_v15 }
 0x21b   :  { %1153 = vrot.lane.b32.xlu0 %v2559_v54, %s1985_s2  ;;  %v2576_v47 = vmul.f32 %v2573_v3, %v1877_v55 }
 0x21c   :  { %1155 = vrot.lane.b32.xlu1 %v2564_v61, %s1985_s2 }
 0x21f   :  { %1157 = vrot.lane.b32.xlu0 %v2569_v48, %s1985_s2 }
 0x220   :  { %1159 = vrot.lane.b32.xlu1 %v2576_v47, %s1985_s2 }
 0x223   :  { %1195 = vrot.lane.b32.xlu0 %v2559_v54, %s1980_s29 }
 0x224   :  { %1197 = vrot.lane.b32.xlu1 %v2564_v61, %s1980_s29 }
 0x227   :  { %1199 = vrot.lane.b32.xlu0 %v2569_v48, %s1980_s29 }
 0x228   :  { %1201 = vrot.lane.b32.xlu1 %v2576_v47, %s1980_s29 }
 0x22b   :  { %1237 = vrot.lane.b32.xlu0 %v2559_v54, %s1986_s1 }
 0x22c   :  { %1239 = vrot.lane.b32.xlu1 %v2564_v61, %s1986_s1 }
 0x22f   :  { %1241 = vrot.lane.b32.xlu0 %v2569_v48, %s1986_s1 }
 0x230   :  { %1243 = vrot.lane.b32.xlu1 %v2576_v47, %s1986_s1 }
 0x233   :  { %1279 = vrot.lane.b32.xlu0 %v2559_v54, %s1987_s24 }
 0x234   :  { %1281 = vrot.lane.b32.xlu1 %v2564_v61, %s1987_s24 }
 0x237   :  { %1283 = vrot.lane.b32.xlu0 %v2569_v48, %s1987_s24 }
 0x238   :  { %1285 = vrot.lane.b32.xlu1 %v2576_v47, %s1987_s24 }
 0x23b   :  { %1325 = vrot.lane.b32.xlu0 %v2559_v54, %s1988_s25 }
 0x23c   :  { %1327 = vrot.lane.b32.xlu1 %v2564_v61, %s1988_s25 }
 0x23f   :  { %1329 = vrot.lane.b32.xlu0 %v2569_v48, %s1988_s25 }
 0x240   :  { %1331 = vrot.lane.b32.xlu1 %v2576_v47, %s1988_s25 }
 0x243   :  { %1367 = vrot.lane.b32.xlu0 %v2559_v54, %s1989_s26 }
 0x244   :  { %1369 = vrot.lane.b32.xlu1 %v2564_v61, %s1989_s26 }
 0x247   :  { %1371 = vrot.lane.b32.xlu0 %v2569_v48, %s1989_s26 }
 0x248   :  { %1373 = vrot.lane.b32.xlu1 %v2576_v47, %s1989_s26 }
 0x24b   :  { %1409 = vrot.lane.b32.xlu0 %v2559_v54, %s1990_s27 }
 0x24c   :  { %1411 = vrot.lane.b32.xlu1 %v2564_v61, %s1990_s27 }
 0x24f   :  { %1413 = vrot.lane.b32.xlu0 %v2569_v48, %s1990_s27 }
 0x250   :  { %1415 = vrot.lane.b32.xlu1 %v2576_v47, %s1990_s27 }
 0x253   :  { %1451 = vrot.lane.b32.xlu0 %v2559_v54, %s1991_s30 }
 0x254   :  { %1453 = vrot.lane.b32.xlu1 %v2564_v61, %s1991_s30 }
 0x257   :  { %1455 = vrot.lane.b32.xlu0 %v2569_v48, %s1991_s30 }
 0x258   :  { %1457 = vrot.lane.b32.xlu1 %v2576_v47, %s1991_s30 }
 0x28d   :  { %v1154_v0 = vpop.permute.xlu0 %1153 }
 0x28e   :  { %v1156_v2 = vpop.permute.xlu1 %1155 }
 0x28f   :  { %v1163_v4 = vsel %vm156_vm0, %v1154_v0, %v1156_v2 }
 0x290   :  { %v1188_v23 = vmul.f32 %v1174_v6, %v1163_v4  ;;  %v1262_v6 = vrot.slane %v1249_v38, %v2249_v16 }
 0x291   :  { %v1158_v59 = vpop.permute.xlu0 %1157 }
 0x292   :  { %v1160_v58 = vpop.permute.xlu1 %1159  ;;  %v1162_v17 = vsel %vm156_vm0, %v1156_v2, %v1158_v59  ;;  %v1304_v2 = vrot.slane %v1291_v10, %v2249_v16 }
 0x293   :  { %v1161_v29 = vsel %vm156_vm0, %v1158_v59, %v1160_v58  ;;  %v1164_v30 = vsel %vm156_vm0, %v1160_v58, %v1154_v0  ;;  %v1189_v42 = vmul.f32 %v1178_v28, %v1162_v17  ;;  %v1308_v58 = vrot.slane %v1291_v10, %v2245_v14 }
 0x294   :  { %v1187_v31 = vmul.f32 %v1170_v19, %v1164_v30  ;;  %v1190_v39 = vmul.f32 %v1182_v20, %v1161_v29 }
 0x295   :  { %v1196_v9 = vpop.permute.xlu0 %1195 }
 0x296   :  { %v1198_v18 = vpop.permute.xlu1 %1197 }
 0x297   :  { %v1205_v21 = vsel %vm241_vm2, %v1196_v9, %v1198_v18 }
 0x298   :  { %v1230_v24 = vmul.f32 %v1216_v1, %v1205_v21 }
 0x299   :  { %v1200_v25 = vpop.permute.xlu0 %1199 }
 0x29a   :  { %v1204_v26 = vsel %vm241_vm2, %v1198_v18, %v1200_v25  ;;  %v1202_v33 = vpop.permute.xlu1 %1201  ;;  %v1808_v8 = vpack.c.bf16 %v1230_v24, %v1188_v23 }
 0x29b   :  { %v1231_v35 = vmul.f32 %v1220_v22, %v1204_v26  ;;  %v1203_v36 = vsel %vm241_vm2, %v1200_v25, %v1202_v33  ;;  %v1206_v32 = vsel %vm241_vm2, %v1202_v33, %v1196_v9 }
 0x29c   :  { %v1229_v40 = vmul.f32 %v1212_v13, %v1206_v32  ;;  %v1232_v41 = vmul.f32 %v1224_v27, %v1203_v36  ;;  %1809 = vmatprep.subr.bf16.mxu0 %v1808_v8  ;;  %v1337_v13 = vld [vmem:[#allocation7 + $0x14] sm:$0xf] }
 0x29d   :  { %v1238_v43 = vpop.permute.xlu0 %1237  ;;  %v1826_v34 = vpack.c.bf16 %v1231_v35, %v1189_v42  ;;  %v1342_v33 = vrot.slane %v1337_v13, %v2237_v11 }
 0x29e   :  { %v1810_v44 = vpack.c.bf16 %v1229_v40, %v1187_v31  ;;  %v1240_v49 = vpop.permute.xlu1 %1239  ;;  %v1824_v37 = vpack.c.bf16 %v1232_v41, %v1190_v39  ;;  %v1346_v31 = vrot.slane %v1337_v13, %v2247_v15  ;;  %v1350_v39 = vrot.slane %v1337_v13, %v2249_v16 }
 0x29f   :  { %v1247_v55 = vsel %vm327_vm4, %v1238_v43, %v1240_v49  ;;  %v1354_v40 = vrot.slane %v1337_v13, %v2245_v14 }
 0x2a0   :  { %1811 = vmatpush1.bf16.msra.mxu0 %v1810_v44  ;;  %1825 = vmatprep.subr.bf16.mxu1 %v1824_v37  ;;  %v1272_v7 = vmul.f32 %v1258_v51, %v1247_v55 }
 0x2a1   :  { %v1242_v50 = vpop.permute.xlu0 %1241  ;;  %1827 = vmatpush1.bf16.msra.mxu1 %v1826_v34 }
 0x2a2   :  { %v1244_v45 = vpop.permute.xlu1 %1243  ;;  %v1246_v18 = vsel %vm327_vm4, %v1240_v49, %v1242_v50 }
 0x2a3   :  { %v1245_v1 = vsel %vm327_vm4, %v1242_v50, %v1244_v45  ;;  %v1248_v4 = vsel %vm327_vm4, %v1244_v45, %v1238_v43  ;;  %v1273_v25 = vmul.f32 %v1262_v6, %v1246_v18 }
 0x2a4   :  { %v1271_v27 = vmul.f32 %v1254_v63, %v1248_v4  ;;  %v1274_v28 = vmul.f32 %v1266_v5, %v1245_v1  ;;  %v1379_v5 = vld [vmem:[#allocation7 + $0x18] sm:$0xf] }
 0x2a5   :  { %v1280_v62 = vpop.permute.xlu0 %1279  ;;  %v1396_v1 = vrot.slane %v1379_v5, %v2245_v14 }
 0x2a6   :  { %v1282_v57 = vpop.permute.xlu1 %1281 }
 0x2a7   :  { %v1289_v0 = vsel %vm413_vm5, %v1280_v62, %v1282_v57 }
 0x2a8   :  { %v1314_v59 = vmul.f32 %v1300_v52, %v1289_v0  ;;  %v1421_v0 = vld [vmem:[#allocation7 + $0x1c] sm:$0xf] }
 0x2a9   :  { %v1284_v9 = vpop.permute.xlu0 %1283  ;;  %v1434_v4 = vrot.slane %v1421_v0, %v2249_v16 }
 0x2aa   :  { %v1288_v19 = vsel %vm413_vm5, %v1282_v57, %v1284_v9  ;;  %v1286_v20 = vpop.permute.xlu1 %1285  ;;  %v1812_v21 = vpack.c.bf16 %v1314_v59, %v1272_v7  ;;  %v1384_v7 = vrot.slane %v1379_v5, %v2237_v11 }
 0x2ab   :  { %v1315_v22 = vmul.f32 %v1304_v2, %v1288_v19  ;;  %v1287_v23 = vsel %vm413_vm5, %v1284_v9, %v1286_v20  ;;  %v1290_v24 = vsel %vm413_vm5, %v1286_v20, %v1280_v62  ;;  %v1438_v9 = vrot.slane %v1421_v0, %v2245_v14 }
 0x2ac   :  { %v1313_v29 = vmul.f32 %v1296_v60, %v1290_v24  ;;  %v1316_v30 = vmul.f32 %v1308_v58, %v1287_v23  ;;  %1813 = vmatprep.subr.bf16.mxu0 %v1812_v21  ;;  %v1430_v58 = vrot.slane %v1421_v0, %v2247_v15 }
 0x2ad   :  { %v1326_v17 = vpop.permute.xlu0 %1325  ;;  %v1830_v36 = vpack.c.bf16 %v1315_v22, %v1273_v25 }
 0x2ae   :  { %v1814_v26 = vpack.c.bf16 %v1313_v29, %v1271_v27  ;;  %v1328_v8 = vpop.permute.xlu1 %1327  ;;  %v1828_v35 = vpack.c.bf16 %v1316_v30, %v1274_v28 }
 0x2af   :  { %v1335_v32 = vsel %vm507_vm6, %v1326_v17, %v1328_v8 }
 0x2b0   :  { %1815 = vmatpush1.bf16.msra.mxu0 %v1814_v26  ;;  %1829 = vmatprep.subr.bf16.mxu1 %v1828_v35  ;;  %v1359_v42 = vmul.f32 %v1342_v33, %v1335_v32 }
 0x2b1   :  { %v1330_v41 = vpop.permute.xlu0 %1329  ;;  %1831 = vmatpush1.bf16.msra.mxu1 %v1830_v36 }
 0x2b2   :  { %v1334_v43 = vsel %vm507_vm6, %v1328_v8, %v1330_v41  ;;  %v1332_v44 = vpop.permute.xlu1 %1331  ;;  %v1818_v51 = vpack.c.bf16 %v1359_v42, %v2559_v54  ;;  %v1426_v54 = vrot.slane %v1421_v0, %v2237_v11  ;;  %v1463_v8 = vld [vmem:[#allocation7 + $0x20] sm:$0xf] }
 0x2b3   :  { %v1360_v49 = vmul.f32 %v1346_v31, %v1334_v43  ;;  %v1333_v37 = vsel %vm507_vm6, %v1330_v41, %v1332_v44  ;;  %v1336_v34 = vsel %vm507_vm6, %v1332_v44, %v1326_v17  ;;  %v1468_v41 = vrot.slane %v1463_v8, %v2237_v11 }
 0x2b4   :  { %v1361_v38 = vmul.f32 %v1350_v39, %v1333_v37  ;;  %v1362_v50 = vmul.f32 %v1354_v40, %v1336_v34  ;;  %v1472_v40 = vrot.slane %v1463_v8, %v2247_v15  ;;  %v1476_v42 = vrot.slane %v1463_v8, %v2249_v16 }
 0x2b5   :  { %v1368_v10 = vpop.permute.xlu0 %1367  ;;  %v1816_v45 = vpack.c.bf16 %v1360_v49, %v2564_v61  ;;  %v1388_v61 = vrot.slane %v1379_v5, %v2247_v15  ;;  %v1480_v43 = vrot.slane %v1463_v8, %v2245_v14  ;;  %v1493_v14 = vld [vmem:[%s2788_s4] sm:$0xff]  ;;  %s1993_s4 = smov [#allocation9]  }
 0x2b6   :  { %v1834_v52 = vpack.c.bf16 %v1361_v38, %v2569_v48  ;;  %v1370_v55 = vpop.permute.xlu1 %1369  ;;  %v1832_v62 = vpack.c.bf16 %v1362_v50, %v2576_v47  ;;  %v1392_v47 = vrot.slane %v1379_v5, %v2249_v16  ;;  %s1706_s18 = sshll.u32 %s1993_s4, 4  ;;  %s1707_s18 = int_to_ptr.vmem [resolvable:$true] %s1706_s18 }
 0x2b7   :  { %1817 = vmatprep.subr.bf16.mxu0 %v1816_v45  ;;  %v1377_v48 = vsel %vm593_vm7, %v1368_v10, %v1370_v55  ;;  %v1007_v45 = vpop.f32.mrb[2].mxu0  ;;  %s1950_s19 = scalar_lea.vmem %s1707_s18, 512  ;;  %p1955_p3 = scmp.lt.s32.totalorder %s1707_s18, %s1707_s18 }
 0x2b8   :  { %1819 = vmatpush1.bf16.msra.mxu0 %v1818_v51  ;;  %1833 = vmatprep.subr.bf16.mxu1 %v1832_v62  ;;  %v1401_v21 = vmul.f32 %v1384_v7, %v1377_v48  ;;  %v1090_v51 = vpop.f32.mrb[2].mxu1  ;;  %v1730_v12 = vmul.f32 -1.442695, %v1007_v45  ;;  %p1951_p2 = scmp.ne.s32.totalorder %s1707_s18, %s1950_s19  ;;  %p1956_p4 = scmp.lt.s32.totalorder %s1950_s19, %s1950_s19 }
 0x2b9   :  { %v1372_v57 = vpop.permute.xlu0 %1371  ;;  %1835 = vmatpush1.bf16.msra.mxu1 %v1834_v52  ;;  %v1009_v52 = vpop.f32.mrb[3].mxu0 }
 0x2ba   :  { %v1374_v63 = vpop.permute.xlu1 %1373  ;;  %v1376_v6 = vsel %vm593_vm7, %v1370_v55, %v1372_v57  ;;  %v1092_v55 = vpop.f32.mrb[3].mxu1  ;;  %v1731_v62 = vmul.f32 -1.442695, %v1009_v52  ;;  %1878 = vpow2.f32 %v1730_v12  ;;  %p1957_p5 = por %p1956_p4, %p1955_p3 }
 0x2bb   :  { %v1375_v18 = vsel %vm593_vm7, %v1372_v57, %v1374_v63  ;;  %v1378_v19 = vsel %vm593_vm7, %v1374_v63, %v1368_v10  ;;  %v1402_v13 = vmul.f32 %v1388_v61, %v1376_v6  ;;  %v1732_v57 = vmul.f32 -1.442695, %v1090_v51 }
 0x2bc   :  { %v1403_v30 = vmul.f32 %v1392_v47, %v1375_v18  ;;  %v1404_v25 = vmul.f32 %v1396_v1, %v1378_v19  ;;  %v1733_v63 = vmul.f32 -1.442695, %v1092_v55  ;;  %1880 = vpow2.f32 %v1731_v62  ;;  %p1958_p6 = pnand %p1957_p5, %p1951_p2 }
 0x2bd   :  { %v1410_v2 = vpop.permute.xlu0 %1409  ;;  %1882 = vpow2.f32 %v1732_v57 }
 0x2be   :  { %v1412_v59 = vpop.permute.xlu1 %1411  ;;  %1884 = vpow2.f32 %v1733_v63 }
 0x2bf   :  { %v1419_v60 = vsel %vm679_vm8, %v1410_v2, %v1412_v59 }
 0x2c0   :  { %v1443_v22 = vmul.f32 %v1426_v54, %v1419_v60 }
 0x2c1   :  { %v1414_v20 = vpop.permute.xlu0 %1413 }
 0x2c2   :  { %v1418_v23 = vsel %vm679_vm8, %v1412_v59, %v1414_v20  ;;  %v1416_v24 = vpop.permute.xlu1 %1415  ;;  %v1822_v36 = vpack.c.bf16 %v1443_v22, %v1401_v21 }
 0x2c3   :  { %v1444_v27 = vmul.f32 %v1430_v58, %v1418_v23  ;;  %v1417_v28 = vsel %vm679_vm8, %v1414_v20, %v1416_v24  ;;  %v1420_v29 = vsel %vm679_vm8, %v1416_v24, %v1410_v2 }
 0x2c4   :  { %v1445_v17 = vmul.f32 %v1434_v4, %v1417_v28  ;;  %v1446_v26 = vmul.f32 %v1438_v9, %v1420_v29  ;;  %v1879_v5 = vpop.eup %1878 }
 0x2c5   :  { %v1452_v33 = vpop.permute.xlu0 %1451  ;;  %v1820_v35 = vpack.c.bf16 %v1444_v27, %v1402_v13  ;;  %v1137_v61 = vadd.f32 1.0, %v1879_v5 }
 0x2c6   :  { %v1838_v32 = vpack.c.bf16 %v1445_v17, %v1403_v30  ;;  %v1454_v31 = vpop.permute.xlu1 %1453  ;;  %v1836_v39 = vpack.c.bf16 %v1446_v26, %v1404_v25  ;;  %v1881_v0 = vpop.eup %1880 }
 0x2c7   :  { %1821 = vmatprep.subr.bf16.mxu0 %v1820_v35  ;;  %v1461_v44 = vsel %vm765_vm9, %v1452_v33, %v1454_v31  ;;  %v1883_v2 = vpop.eup %1882  ;;  %v1138_v54 = vadd.f32 1.0, %v1881_v0  ;;  %1886 = vrcp.f32 %v1137_v61 }
 0x2c8   :  { %1823 = vmatpush1.bf16.msra.mxu0 %v1822_v36  ;;  %1837 = vmatprep.subr.bf16.mxu1 %v1836_v39  ;;  %v1485_v50 = vmul.f32 %v1468_v41, %v1461_v44  ;;  %v1885_v7 = vpop.eup %1884  ;;  %v1139_v59 = vadd.f32 1.0, %v1883_v2 }
 0x2c9   :  { %v1456_v49 = vpop.permute.xlu0 %1455  ;;  %1839 = vmatpush1.bf16.msra.mxu1 %v1838_v32  ;;  %v1140_v48 = vadd.f32 1.0, %v1885_v7  ;;  %1888 = vrcp.f32 %v1138_v54 }
 0x2ca   :  { %v1460_v37 = vsel %vm765_vm9, %v1454_v31, %v1456_v49  ;;  %v1458_v34 = vpop.permute.xlu1 %1457  ;;  %1890 = vrcp.f32 %v1139_v59 }
 0x2cb   :  { %v1486_v38 = vmul.f32 %v1472_v40, %v1460_v37  ;;  %v1459_v15 = vsel %vm765_vm9, %v1456_v49, %v1458_v34  ;;  %v1462_v11 = vsel %vm765_vm9, %v1458_v34, %v1452_v33  ;;  %1892 = vrcp.f32 %v1140_v48 }
 0x2cc   :  { %v1487_v16 = vmul.f32 %v1476_v42, %v1459_v15  ;;  %v1488_v10 = vmul.f32 %v1480_v43, %v1462_v11 }
 0x2cd   :  { %1550 = vmatprep.subr.mxu0 %v1486_v38 }
 0x2ce   :  { %1551 = vmatpush1.msra.mxu0 %v1485_v50  ;;  %1621 = vmatprep.subr.mxu1 %v1488_v10 }
 0x2cf   :  { %1734 = vmatmul.mubr.msk.f32.vlgmr.msra.gmra.mrb[4].mxu0 %vm1530_vm10, %v1493_v14  ;;  %1622 = vmatpush1.msra.mxu1 %v1487_v16 }
 0x2d0   :  { %1735 = vmatmul.mubr.msk.f32.vlgmr.msra.gmra.mrb[4].mxu1 %vm1530_vm10, %v1493_v14 }
 0x2d1   :  { %v1887_v1 = vpop.eup %1886 }
 0x2d3   :  { %v1889_v4 = vpop.eup %1888 }
 0x2d4   :  { %v1891_v9 = vpop.eup %1890 }
 0x2d5   :  { %v1893_v18 = vpop.eup %1892 }
 0x3a2   :  { %v1600_v47 = vpop.f32.mrb[4].mxu0 }
 0x3a3   :  { %1894 = vtanh.f32 %v1600_v47  ;;  %v1602_v60 = vpop.f32.mrb[5].mxu0  ;;  %v1671_v58 = vpop.f32.mrb[4].mxu1 }
 0x3a4   :  { %1896 = vtanh.f32 %v1602_v60  ;;  %v1673_v6 = vpop.f32.mrb[5].mxu1 }
 0x3a5   :  { %1898 = vtanh.f32 %v1671_v58 }
 0x3a6   :  { %1900 = vtanh.f32 %v1673_v6 }
 0x3ad   :  { %v1895_v19 = vpop.eup %1894 }
 0x3ae   :  { %v1897_v20 = vpop.eup %1896  ;;  %v1684_v21 = vsub.f32 %v1895_v19, %v2556_v53 }
 0x3af   :  { %v1899_v22 = vpop.eup %1898  ;;  %v1685_v23 = vsub.f32 %v1897_v20, %v2561_v56 }
 0x3b0   :  { %v1901_v24 = vpop.eup %1900  ;;  %v1686_v13 = vsub.f32 %v1899_v22, %v2566_v46  ;;  %v1688_v27 = vmul.f32 %v1887_v1, %v1684_v21 }
 0x3b1   :  { %v1687_v28 = vsub.f32 %v1901_v24, %v2573_v3  ;;  %v1689_v29 = vmul.f32 %v1889_v4, %v1685_v23 }
 0x3b2   :  { %v1690_v30 = vmul.f32 %v1891_v9, %v1686_v13  ;;  %v1692_v25 = vadd.f32 %v2556_v53, %v1688_v27 }
 0x3b3   :  { %v1691_v17 = vmul.f32 %v1893_v18, %v1687_v28  ;;  %v1693_v26 = vadd.f32 %v2561_v56, %v1689_v29 }
 0x3b4   :  { %v1694_v33 = vadd.f32 %v2566_v46, %v1690_v30  ;;  %1696 = vst [vmem:[#allocation9] sm:$0xff] %v1692_v25 }
 0x3b5   :  { %v1695_v8 = vadd.f32 %v2573_v3, %v1691_v17  ;;  %1697 = vst [vmem:[#allocation9 + $0x8] sm:$0xff] %v1693_v26 }
 0x3b6   :  { %1699 = vst [vmem:[#allocation9 + $0x10] sm:$0xff] %v1694_v33 }
 0x3b7   :  { %1700 = vst [vmem:[#allocation9 + $0x18] sm:$0xff] %v1695_v8 }
 0x3b8   :  { %1961 = shalt.err (!%p1958_p6)
}
 0x3b9   :  { %s1962_s21 = scalar_lea.hbm %s2789_s5, 512 }
 0x3ba   :  { %p1963_p7 = scmp.ne.s32.totalorder %s2789_s5, %s1962_s21  ;;  %p1966_p8 = scmp.lt.u32.totalorder %s1962_s21, %s2789_s5 }
 0x3bc   :  { %p1968_p9 = pnand %p1966_p8, %p1963_p7 }
 0x3be   :  { %1971 = shalt.err (!%p1968_p9)
}
 0x3bf   :  { %1712 = dma.vmem_to_hbm [thread:$0]  %s1707_s18, 512, %s2789_s5, [#allocation6], %s1979_s28, %s1979_s28, %s1980_s29  }
 0x3c0   :  { %1976 = dma.done.wait [#allocation6], 512  }
 0x3c1   :  { %1977 = vsyncadd [#allocation6], 4294966784 }
 0x3c2   :  { %1716 = vsyncpa [#allocation5], 1 }
 0x3c3   :  { %1717 = vsyncpa [#allocation8], 1 }
 0x3c4   :  { %1718 = vsyncpa [#allocation6], 1 }

</bundles_post_ra>
